<compile_context>
chip_gen: v6e
topology: v6e:2x2x1
jax: 0.10.0
libtpu: 0.0.40
codegen_flags: <defaults>
</compile_context>

<pallas_src>
import functools
import math

import jax
import jax.numpy as jnp
from jax import lax
from jax.experimental import pallas as pl
from jax.experimental.pallas import tpu as pltpu


# ----------------------------------------------------------------------------
# Pallas kernels
# ----------------------------------------------------------------------------

def _mm_kernel(a_ref, b_ref, s_ref, c_ref, o_ref, acc_ref, *, act):
    """Tiled matmul with fused per-column scale/bias (folded BN) + activation."""
    @pl.when(pl.program_id(2) == 0)
    def _init():
        acc_ref[...] = jnp.zeros_like(acc_ref)

    acc_ref[...] += jnp.dot(a_ref[...], b_ref[...],
                            preferred_element_type=jnp.float32)

    @pl.when(pl.program_id(2) == pl.num_programs(2) - 1)
    def _store():
        y = acc_ref[...] * s_ref[...] + c_ref[...]
        if act == "relu":
            y = jnp.maximum(y, 0.0)
        elif act == "sigmoid":
            y = 1.0 / (1.0 + jnp.exp(-y))
        o_ref[...] = y.astype(o_ref.dtype)


def _mm_res_kernel(a_ref, b_ref, s_ref, c_ref, r_ref, o_ref, acc_ref):
    """Matmul + folded BN + residual add + ReLU (bottleneck conv3 epilogue)."""
    @pl.when(pl.program_id(2) == 0)
    def _init():
        acc_ref[...] = jnp.zeros_like(acc_ref)

    acc_ref[...] += jnp.dot(a_ref[...], b_ref[...],
                            preferred_element_type=jnp.float32)

    @pl.when(pl.program_id(2) == pl.num_programs(2) - 1)
    def _store():
        y = acc_ref[...] * s_ref[...] + c_ref[...] + r_ref[...]
        o_ref[...] = jnp.maximum(y, 0.0).astype(o_ref.dtype)


def _gate_res_relu_kernel(x_ref, g_ref, r_ref, o_ref):
    """SE epilogue: out = relu(x * gate + residual). gate is (1,1,C)."""
    y = x_ref[...] * g_ref[...] + r_ref[...]
    o_ref[...] = jnp.maximum(y, 0.0).astype(o_ref.dtype)


def _maxpool_s1_kernel(x_ref, o_ref, xpad_ref, rowmax_ref, *, k, p, h, w):
    """Separable k x k stride-1 'same' max pool, padding built in VMEM."""
    c = xpad_ref.shape[-1]
    neg = jnp.finfo(xpad_ref.dtype).min
    if p > 0:
        xpad_ref[0:p, :, :] = jnp.full((p, w + 2 * p, c), neg, xpad_ref.dtype)
        xpad_ref[h + p:h + 2 * p, :, :] = jnp.full((p, w + 2 * p, c), neg,
                                                   xpad_ref.dtype)
        xpad_ref[p:p + h, 0:p, :] = jnp.full((h, p, c), neg, xpad_ref.dtype)
        xpad_ref[p:p + h, w + p:w + 2 * p, :] = jnp.full((h, p, c), neg,
                                                         xpad_ref.dtype)
    xpad_ref[p:p + h, p:p + w, :] = x_ref[0]

    # 1 x k max along W (sublane axis) ...
    row = xpad_ref[:, 0:w, :]
    for dx in range(1, k):
        row = jnp.maximum(row, xpad_ref[:, dx:dx + w, :])
    rowmax_ref[...] = row
    # ... then k x 1 max along H (leading axis) on the row-reduced intermediate.
    col = rowmax_ref[0:h, :, :]
    for dy in range(1, k):
        col = jnp.maximum(col, rowmax_ref[dy:dy + h, :, :])
    o_ref[0] = col


# ----------------------------------------------------------------------------
# Memoized pallas_call builders (compile once per distinct shape)
# ----------------------------------------------------------------------------

_TM_MAX, _TK_MAX, _TN_MAX = 512, 2048, 1024


def _pick_tile(dim, cap, quantum):
    """Largest t <= cap with t % quantum == 0 and dim % t == 0; else full dim."""
    t = (min(dim, cap) // quantum) * quantum
    while t >= quantum:
        if dim % t == 0:
            return t
        t -= quantum
    return dim  # full dimension (legal block even if not quantum-aligned)


@functools.lru_cache(maxsize=None)
def _build_matmul(M, K, N, act, with_residual):
    tm = _pick_tile(M, _TM_MAX, 8)
    tk = _pick_tile(K, _TK_MAX, 128)
    tn = _pick_tile(N, _TN_MAX, 128)
    grid = (M // tm, N // tn, K // tk)

    in_specs = [
        pl.BlockSpec((tm, tk), lambda i, j, k: (i, k)),
        pl.BlockSpec((tk, tn), lambda i, j, k: (k, j)),
        pl.BlockSpec((1, tn), lambda i, j, k: (0, j)),   # scale
        pl.BlockSpec((1, tn), lambda i, j, k: (0, j)),   # bias
    ]
    if with_residual:
        in_specs.append(pl.BlockSpec((tm, tn), lambda i, j, k: (i, j)))
        kernel = _mm_res_kernel
    else:
        kernel = functools.partial(_mm_kernel, act=act)

    call = pl.pallas_call(
        kernel,
        out_shape=jax.ShapeDtypeStruct((M, N), jnp.float32),
        grid_spec=pltpu.PrefetchScalarGridSpec(
            num_scalar_prefetch=0,
            grid=grid,
            in_specs=in_specs,
            out_specs=pl.BlockSpec((tm, tn), lambda i, j, k: (i, j)),
            scratch_shapes=[pltpu.VMEM((tm, tn), jnp.float32)],
        ),
        compiler_params=pltpu.CompilerParams(
            dimension_semantics=("parallel", "parallel", "arbitrary"),
            vmem_limit_bytes=48 * 1024 * 1024,
        ),
    )
    return jax.jit(call)


@functools.lru_cache(maxsize=None)
def _build_gate_res(B, HW, C):
    call = pl.pallas_call(
        _gate_res_relu_kernel,
        out_shape=jax.ShapeDtypeStruct((B, HW, C), jnp.float32),
        grid_spec=pltpu.PrefetchScalarGridSpec(
            num_scalar_prefetch=0,
            grid=(B,),
            in_specs=[
                pl.BlockSpec((1, HW, C), lambda b: (b, 0, 0)),
                pl.BlockSpec((1, 1, C), lambda b: (b, 0, 0)),
                pl.BlockSpec((1, HW, C), lambda b: (b, 0, 0)),
            ],
            out_specs=pl.BlockSpec((1, HW, C), lambda b: (b, 0, 0)),
        ),
        compiler_params=pltpu.CompilerParams(
            dimension_semantics=("parallel",),
        ),
    )
    return jax.jit(call)


@functools.lru_cache(maxsize=None)
def _build_maxpool_s1(B, H, W, C, k):
    p = (k - 1) // 2
    kernel = functools.partial(_maxpool_s1_kernel, k=k, p=p, h=H, w=W)
    call = pl.pallas_call(
        kernel,
        out_shape=jax.ShapeDtypeStruct((B, H, W, C), jnp.float32),
        grid_spec=pltpu.PrefetchScalarGridSpec(
            num_scalar_prefetch=0,
            grid=(B,),
            in_specs=[pl.BlockSpec((1, H, W, C), lambda b: (b, 0, 0, 0))],
            out_specs=pl.BlockSpec((1, H, W, C), lambda b: (b, 0, 0, 0)),
            scratch_shapes=[
                pltpu.VMEM((H + 2 * p, W + 2 * p, C), jnp.float32),
                pltpu.VMEM((H + 2 * p, W, C), jnp.float32),
            ],
        ),
        compiler_params=pltpu.CompilerParams(
            dimension_semantics=("parallel",),
        ),
    )
    return jax.jit(call)


# ----------------------------------------------------------------------------
# Wrappers (layout glue in XLA, compute in Pallas)
# ----------------------------------------------------------------------------

def _matmul_fused(a, b, scale, bias, act=None, residual=None):
    M, K = a.shape
    K2, N = b.shape
    assert K == K2
    a = a.astype(jnp.float32)
    b = b.astype(jnp.float32)
    Mp = ((M + 7) // 8) * 8  # keep the sublane dim 8-aligned (only hits SE FCs)
    if Mp != M:
        a = jnp.pad(a, ((0, Mp - M), (0, 0)))
        if residual is not None:
            residual = jnp.pad(residual, ((0, Mp - M), (0, 0)))
    scale = scale.reshape(1, N).astype(jnp.float32)
    bias = bias.reshape(1, N).astype(jnp.float32)
    fn = _build_matmul(Mp, K, N, act, residual is not None)
    if residual is not None:
        out = fn(a, b, scale, bias, residual.astype(jnp.float32))
    else:
        out = fn(a, b, scale, bias)
    return out[:M] if Mp != M else out


def _im2col(x, kh, kw, stride, pad):
    """NHWC -> (B*Ho*Wo, kh*kw*C) patches, ordered (dy, dx, c). Layout glue."""
    B, H, W, C = x.shape
    if pad:
        x = jnp.pad(x, ((0, 0), (pad, pad), (pad, pad), (0, 0)))
    Hp, Wp = H + 2 * pad, W + 2 * pad
    Ho = (Hp - kh) // stride + 1
    Wo = (Wp - kw) // stride + 1
    if kh == 1 and kw == 1 and stride == 1:
        patches = x
    else:
        cols = []
        for dy in range(kh):
            for dx in range(kw):
                cols.append(x[:, dy:dy + (Ho - 1) * stride + 1:stride,
                              dx:dx + (Wo - 1) * stride + 1:stride, :])
        patches = jnp.concatenate(cols, axis=-1)
    return patches.reshape(B * Ho * Wo, kh * kw * C), (B, Ho, Wo)


def _bn_fold(bn, eps=1e-5):
    s = bn["gamma"] / jnp.sqrt(bn["var"] + eps)
    return s, bn["beta"] - bn["mean"] * s


def _conv_bn_act(x, w, bn, stride, pad, act):
    kh, kw, cin, cout = w.shape
    patches, (B, Ho, Wo) = _im2col(x, kh, kw, stride, pad)
    scale, bias = _bn_fold(bn)
    y = _matmul_fused(patches, w.reshape(kh * kw * cin, cout), scale, bias, act=act)
    return y.reshape(B, Ho, Wo, cout)


def _pixel_shuffle(x, r):
    """PixelShuffle(r) in NHWC (pure layout op, left to XLA)."""
    B, H, W, C = x.shape
    c = C // (r * r)
    x = x.reshape(B, H, W, c, r, r)
    x = jnp.transpose(x, (0, 1, 4, 2, 5, 3))
    return x.reshape(B, H * r, W * r, c)


def _maxpool_3x3_s2_p1(x):
    B, H, W, C = x.shape
    y = _build_maxpool_s1(B, H, W, C, 3)(x)   # stride-1 "same" max (Pallas)
    return y[:, ::2, ::2, :]                  # stride-2 subsample (layout, XLA)


# ----------------------------------------------------------------------------
# FastPose / InferenNet_fast forward (Pallas path)
# ----------------------------------------------------------------------------

def _bottleneck(x, blk):
    B, H, W, Cin = x.shape
    s = blk["stride"]
    out = _conv_bn_act(x, blk["conv1_w"], blk["bn1"], 1, 0, "relu")
    out = _conv_bn_act(out, blk["conv2_w"], blk["bn2"], s, 1, "relu")
    B2, Ho, Wo, planes = out.shape
    cout = blk["conv3_w"].shape[-1]
    a3 = out.reshape(B2 * Ho * Wo, planes)
    w3 = blk["conv3_w"].reshape(planes, cout)
    s3, b3 = _bn_fold(blk["bn3"])

    if "se" in blk:  # first block of each layer: downsample path + SE gating
        y = _matmul_fused(a3, w3, s3, b3, act=None).reshape(B2, Ho, Wo, cout)
        # SE gate: global avg pool is a tiny reduction left to XLA; FCs in Pallas.
        pooled = jnp.mean(y, axis=(1, 2))
        se = blk["se"]
        ones = jnp.ones((cout,), jnp.float32)
        g = _matmul_fused(pooled, se["fc1_w"], ones, se["fc1_b"], act="relu")
        g = _matmul_fused(g, se["fc2_w"], ones, se["fc2_b"], act="sigmoid")
        # downsample residual branch (1x1 conv stride s) + folded BN
        sd, bd = _bn_fold(blk["ds_bn"])
        rp, _ = _im2col(x, 1, 1, s, 0)
        r = _matmul_fused(rp, blk["ds_conv_w"].reshape(Cin, cout), sd, bd, act=None)
        # fused relu(y * gate + residual)
        fn = _build_gate_res(B2, Ho * Wo, cout)
        out = fn(y.reshape(B2, Ho * Wo, cout), g.reshape(B2, 1, cout),
                 r.reshape(B2, Ho * Wo, cout))
        return out.reshape(B2, Ho, Wo, cout)
    else:
        # residual add + ReLU fused into the conv3 matmul epilogue
        residual = x.reshape(B * H * W, Cin)
        y = _matmul_fused(a3, w3, s3, b3, act=None, residual=residual)
        return y.reshape(B2, Ho, Wo, cout)


def fastpose_forward(x_nchw, params):
    x = jnp.transpose(x_nchw, (0, 2, 3, 1)).astype(jnp.float32)   # NCHW -> NHWC
    # SEResnet stem
    x = _conv_bn_act(x, params["conv1_w"], params["bn1"], 2, 3, "relu")
    x = _maxpool_3x3_s2_p1(x)
    # layer1..layer4
    for blocks in params["layers"]:
        for blk in blocks:
            x = _bottleneck(x, blk)
    # suffle1 + DUC heads
    x = _pixel_shuffle(x, 2)
    x = _conv_bn_act(x, params["duc1_conv_w"], params["duc1_bn"], 1, 1, "relu")
    x = _pixel_shuffle(x, 2)
    x = _conv_bn_act(x, params["duc2_conv_w"], params["duc2_bn"], 1, 1, "relu")
    x = _pixel_shuffle(x, 2)
    # conv_out: 3x3 conv with bias, no BN / activation
    w = params["out_conv_w"]
    kh, kw, cin, cout = w.shape
    patches, (B, Ho, Wo) = _im2col(x, kh, kw, 1, 1)
    y = _matmul_fused(patches, w.reshape(kh * kw * cin, cout),
                      jnp.ones((cout,), jnp.float32), params["out_conv_b"],
                      act=None)
    y = y.reshape(B, Ho, Wo, cout)
    return jnp.transpose(y, (0, 3, 1, 2))                         # NHWC -> NCHW


def inferennet_fast_forward(x_nchw, params):
    out = fastpose_forward(x_nchw, params)
    return out[:, 0:17]   # out.narrow(1, 0, 17)


# ----------------------------------------------------------------------------
# Deterministic parameter construction (stands in for duc_se.pth)
# ----------------------------------------------------------------------------

class _ParamRng:
    def __init__(self, key):
        self._key = key

    def next(self):
        self._key, sub = jax.random.split(self._key)
        return sub


def _conv_w(rng, kh, kw, cin, cout, gain=1.0):
    std = gain * math.sqrt(2.0 / (kh * kw * cin))
    return std * jax.random.normal(rng.next(), (kh, kw, cin, cout), jnp.float32)


def _bn_p(rng, c):
    return dict(
        gamma=1.0 + 0.05 * jax.random.normal(rng.next(), (c,), jnp.float32),
        beta=0.05 * jax.random.normal(rng.next(), (c,), jnp.float32),
        mean=0.05 * jax.random.normal(rng.next(), (c,), jnp.float32),
        var=1.0 + 0.05 * jax.random.uniform(rng.next(), (c,), jnp.float32),
    )


def _linear_p(rng, cin, cout):
    std = 1.0 / math.sqrt(cin)
    return (std * jax.random.normal(rng.next(), (cin, cout), jnp.float32),
            0.05 * jax.random.normal(rng.next(), (cout,), jnp.float32))


def make_fastpose_params(key, num_classes=33):
    rng = _ParamRng(key)
    params = {"conv1_w": _conv_w(rng, 7, 7, 3, 64), "bn1": _bn_p(rng, 64)}
    layer_cfg = [(64, 3, 1), (128, 4, 2), (256, 23, 2), (512, 3, 2)]  # resnet101
    inplanes = 64
    layers = []
    for planes, n_blocks, stride in layer_cfg:
        blocks = []
        for bi in range(n_blocks):
            s = stride if bi == 0 else 1
            blk = {
                "stride": s,
                "conv1_w": _conv_w(rng, 1, 1, inplanes, planes),
                "bn1": _bn_p(rng, planes),
                "conv2_w": _conv_w(rng, 3, 3, planes, planes),
                "bn2": _bn_p(rng, planes),
                # 0.25 gain keeps activations O(1) through 33 residual adds
                "conv3_w": _conv_w(rng, 1, 1, planes, planes * 4, gain=0.25),
                "bn3": _bn_p(rng, planes * 4),
            }
            if bi == 0:  # first block: downsample + SE (reduction=True)
                blk["ds_conv_w"] = _conv_w(rng, 1, 1, inplanes, planes * 4)
                blk["ds_bn"] = _bn_p(rng, planes * 4)
                fc1_w, fc1_b = _linear_p(rng, planes * 4, planes * 4)
                fc2_w, fc2_b = _linear_p(rng, planes * 4, planes * 4)
                blk["se"] = dict(fc1_w=fc1_w, fc1_b=fc1_b, fc2_w=fc2_w, fc2_b=fc2_b)
            blocks.append(blk)
            inplanes = planes * 4
        layers.append(blocks)
    params["layers"] = layers
    params["duc1_conv_w"] = _conv_w(rng, 3, 3, 512, 1024)
    params["duc1_bn"] = _bn_p(rng, 1024)
    params["duc2_conv_w"] = _conv_w(rng, 3, 3, 256, 512)
    params["duc2_bn"] = _bn_p(rng, 512)
    params["out_conv_w"] = _conv_w(rng, 3, 3, 128, num_classes)
    params["out_conv_b"] = 0.05 * jax.random.normal(rng.next(), (num_classes,),
                                                    jnp.float32)
    return params


# ----------------------------------------------------------------------------
# Pure-XLA reference of the same network (correctness cross-check)
# ----------------------------------------------------------------------------

def _ref_conv(x, w, stride, pad):
    return lax.conv_general_dilated(
        x, w, (stride, stride), ((pad, pad), (pad, pad)),
        dimension_numbers=("NHWC", "HWIO", "NHWC"),
        precision=lax.Precision.HIGHEST)


def _ref_bn(x, bn, eps=1e-5):
    return (x - bn["mean"]) * (bn["gamma"] / jnp.sqrt(bn["var"] + eps)) + bn["beta"]


def _ref_bottleneck(x, blk):
    s = blk["stride"]
    out = jax.nn.relu(_ref_bn(_ref_conv(x, blk["conv1_w"], 1, 0), blk["bn1"]))
    out = jax.nn.relu(_ref_bn(_ref_conv(out, blk["conv2_w"], s, 1), blk["bn2"]))
    out = _ref_bn(_ref_conv(out, blk["conv3_w"], 1, 0), blk["bn3"])
    if "se" in blk:
        se = blk["se"]
        g = jnp.mean(out, axis=(1, 2))
        g = jax.nn.relu(jnp.matmul(g, se["fc1_w"],
                                   precision=lax.Precision.HIGHEST) + se["fc1_b"])
        g = jax.nn.sigmoid(jnp.matmul(g, se["fc2_w"],
                                      precision=lax.Precision.HIGHEST) + se["fc2_b"])
        out = out * g[:, None, None, :]
        residual = _ref_bn(_ref_conv(x, blk["ds_conv_w"], s, 0), blk["ds_bn"])
    else:
        residual = x
    return jax.nn.relu(out + residual)


def _reference_forward(x_nchw, params):
    x = jnp.transpose(x_nchw, (0, 2, 3, 1)).astype(jnp.float32)
    x = jax.nn.relu(_ref_bn(_ref_conv(x, params["conv1_w"], 2, 3), params["bn1"]))
    x = lax.reduce_window(x, -jnp.inf, lax.max, (1, 3, 3, 1), (1, 2, 2, 1),
                          ((0, 0), (1, 1), (1, 1), (0, 0)))
    for blocks in params["layers"]:
        for blk in blocks:
            x = _ref_bottleneck(x, blk)
    x = _pixel_shuffle(x, 2)
    x = jax.nn.relu(_ref_bn(_ref_conv(x, params["duc1_conv_w"], 1, 1),
                            params["duc1_bn"]))
    x = _pixel_shuffle(x, 2)
    x = jax.nn.relu(_ref_bn(_ref_conv(x, params["duc2_conv_w"], 1, 1),
                            params["duc2_bn"]))
    x = _pixel_shuffle(x, 2)
    x = _ref_conv(x, params["out_conv_w"], 1, 1) + params["out_conv_b"]
    x = jnp.transpose(x, (0, 3, 1, 2))
    return x[:, 0:17]


# ----------------------------------------------------------------------------
# Main
# ----------------------------------------------------------------------------

if __name__ == "__main__":
    root = jax.random.PRNGKey(0)
    pkey, xkey = jax.random.split(root)
    params = make_fastpose_params(pkey, num_classes=33)
    x = jax.random.normal(xkey, (2, 3, 64, 64), dtype=jnp.float32)

    out = inferennet_fast_forward(x, params)
    out = jax.block_until_ready(out)
    assert out.shape == (2, 17, 16, 16), out.shape
    assert bool(jnp.all(jnp.isfinite(out))), "non-finite values in Pallas output"

    ref = jax.block_until_ready(_reference_forward(x, params))
    # Loose threshold: accounts for MXU f32-emulation / reduction-order
    # differences accumulated across ~100 fused matmuls; real layout/indexing
    # bugs show up as O(1) relative errors.
    rel = float(jnp.max(jnp.abs(out - ref)) / (jnp.max(jnp.abs(ref)) + 1e-6))
    assert rel < 1e-1, f"Pallas vs XLA reference mismatch: rel={rel:.3e}"

    print("KERNEL_OK")
</pallas_src>

<mosaic_0001>
module attributes {stable_mosaic.version = 11 : i64} {
  func.func @_mm_kernel(%arg0: i32, %arg1: i32, %arg2: i32, %arg3: memref<512x147xf32, #tpu.memory_space<vmem>>, %arg4: memref<147x64xf32, #tpu.memory_space<vmem>>, %arg5: memref<1x64xf32, #tpu.memory_space<vmem>>, %arg6: memref<1x64xf32, #tpu.memory_space<vmem>>, %arg7: memref<512x64xf32, #tpu.memory_space<vmem>>, %arg8: memref<512x64xf32, #tpu.memory_space<vmem>>) attributes {dimension_semantics = [#tpu.dimension_semantics<parallel>, #tpu.dimension_semantics<parallel>, #tpu.dimension_semantics<arbitrary>], iteration_bounds = array<i64: 4, 1, 1>, scalar_prefetch = 0 : i64, scratch_operands = 1 : i64, tpu.core_type = #tpu.core_type<tc>, window_params = [{transform_indices = @transform_0, window_bounds = array<i64: 512, 147>}, {transform_indices = @transform_1, window_bounds = array<i64: 147, 64>}, {transform_indices = @transform_2, window_bounds = array<i64: 1, 64>}, {transform_indices = @transform_3, window_bounds = array<i64: 1, 64>}, {transform_indices = @transform_4, window_bounds = array<i64: 512, 64>}]} {
    %c0_i32 = arith.constant 0 : i32
    %0 = arith.cmpi eq, %arg2, %c0_i32 : i32
    %1 = arith.extui %0 : i1 to i32
    %c0_i32_0 = arith.constant 0 : i32
    %2 = arith.cmpi ne, %1, %c0_i32_0 : i32
    scf.if %2 {
      %cst_10 = arith.constant 0.000000e+00 : f32
      %12 = vector.broadcast %cst_10 : f32 to vector<512x64xf32>
      %c0_11 = arith.constant 0 : index
      %c0_12 = arith.constant 0 : index
      %13 = vector.load %arg8[%c0_11, %c0_12] : memref<512x64xf32, #tpu.memory_space<vmem>>, vector<512x64xf32>
      tpu.vector_store %arg8[%c0_11, %c0_12], %12 {strides = array<i32>} : memref<512x64xf32, #tpu.memory_space<vmem>>, vector<512x64xf32>,
    } else {
    }
    %c0 = arith.constant 0 : index
    %c0_1 = arith.constant 0 : index
    %3 = vector.load %arg8[%c0, %c0_1] : memref<512x64xf32, #tpu.memory_space<vmem>>, vector<512x64xf32>
    %c0_2 = arith.constant 0 : index
    %c0_3 = arith.constant 0 : index
    %4 = vector.load %arg3[%c0_2, %c0_3] : memref<512x147xf32, #tpu.memory_space<vmem>>, vector<512x147xf32>
    %c0_4 = arith.constant 0 : index
    %c0_5 = arith.constant 0 : index
    %5 = vector.load %arg4[%c0_4, %c0_5] : memref<147x64xf32, #tpu.memory_space<vmem>>, vector<147x64xf32>
    %cst = arith.constant dense<0.000000e+00> : vector<512x64xf32>
    %6 = tpu.matmul %4, %5, %cst {dimension_numbers = #tpu.dot_dimension_numbers<[1], [0], [0], [1], [0, 0, 1, 1], [], []>} : vector<512x147xf32>, vector<147x64xf32>, vector<512x64xf32> -> vector<512x64xf32>
    %7 = arith.addf %3, %6 : vector<512x64xf32>
    %c0_6 = arith.constant 0 : index
    %c0_7 = arith.constant 0 : index
    %8 = vector.load %arg8[%c0_6, %c0_7] : memref<512x64xf32, #tpu.memory_space<vmem>>, vector<512x64xf32>
    tpu.vector_store %arg8[%c0_6, %c0_7], %7 {strides = array<i32>} : memref<512x64xf32, #tpu.memory_space<vmem>>, vector<512x64xf32>,
    %c0_i32_8 = arith.constant 0 : i32
    %9 = arith.cmpi eq, %arg2, %c0_i32_8 : i32
    %10 = arith.extui %9 : i1 to i32
    %c0_i32_9 = arith.constant 0 : i32
    %11 = arith.cmpi ne, %10, %c0_i32_9 : i32
    scf.if %11 {
      %c0_10 = arith.constant 0 : index
      %c0_11 = arith.constant 0 : index
      %12 = vector.load %arg8[%c0_10, %c0_11] : memref<512x64xf32, #tpu.memory_space<vmem>>, vector<512x64xf32>
      %c0_12 = arith.constant 0 : index
      %c0_13 = arith.constant 0 : index
      %13 = vector.load %arg5[%c0_12, %c0_13] : memref<1x64xf32, #tpu.memory_space<vmem>>, vector<1x64xf32>
      %14 = vector.broadcast %13 : vector<1x64xf32> to vector<512x64xf32>
      %15 = arith.mulf %12, %14 : vector<512x64xf32>
      %c0_14 = arith.constant 0 : index
      %c0_15 = arith.constant 0 : index
      %16 = vector.load %arg6[%c0_14, %c0_15] : memref<1x64xf32, #tpu.memory_space<vmem>>, vector<1x64xf32>
      %17 = vector.broadcast %16 : vector<1x64xf32> to vector<512x64xf32>
      %18 = arith.addf %15, %17 : vector<512x64xf32>
      %cst_16 = arith.constant 0.000000e+00 : f32
      %19 = vector.broadcast %cst_16 : f32 to vector<512x64xf32>
      %20 = arith.maximumf %18, %19 : vector<512x64xf32>
      %c0_17 = arith.constant 0 : index
      %c0_18 = arith.constant 0 : index
      %21 = vector.load %arg7[%c0_17, %c0_18] : memref<512x64xf32, #tpu.memory_space<vmem>>, vector<512x64xf32>
      tpu.vector_store %arg7[%c0_17, %c0_18], %20 {strides = array<i32>} : memref<512x64xf32, #tpu.memory_space<vmem>>, vector<512x64xf32>,
    } else {
    }
    return
  }
  func.func @transform_0(%arg0: i32, %arg1: i32, %arg2: i32) -> (i32, i32) {
    %c0_i32 = arith.constant 0 : i32
    return %arg0, %arg2 : i32, i32
  }
  func.func @transform_1(%arg0: i32, %arg1: i32, %arg2: i32) -> (i32, i32) {
    %c0_i32 = arith.constant 0 : i32
    return %arg2, %arg1 : i32, i32
  }
  func.func @transform_2(%arg0: i32, %arg1: i32, %arg2: i32) -> (i32, i32) {
    %c0_i32 = arith.constant 0 : i32
    %c0_i32_0 = arith.constant 0 : i32
    return %c0_i32, %arg1 : i32, i32
  }
  func.func @transform_3(%arg0: i32, %arg1: i32, %arg2: i32) -> (i32, i32) {
    %c0_i32 = arith.constant 0 : i32
    %c0_i32_0 = arith.constant 0 : i32
    return %c0_i32, %arg1 : i32, i32
  }
  func.func @transform_4(%arg0: i32, %arg1: i32, %arg2: i32) -> (i32, i32) {
    %c0_i32 = arith.constant 0 : i32
    return %arg0, %arg1 : i32, i32
  }
}

</mosaic_0001>

<bundles_post_ra>
// kernel: tpu_custom_call.1
= control target key start
LH: loop header
LB: loop body
LE: loop exit
PB: predicated region body
PF: predicated region fallthrough
CT: control target
= control target key end

     0   :  { %s1960_s15 = smov 0   ;;  %s1962_s16 = smov 0   ;;  %s2775_s0 = inlined_call_operand.vmem [shape: f32[2048,147], index: 0, kind: input, shape index: {}]   ;;  %s2776_s1 = inlined_call_operand.vmem [shape: f32[147,64], index: 1, kind: input, shape index: {}]   ;;  %s2777_s2 = inlined_call_operand.vmem [shape: f32[1,64], index: 2, kind: input, shape index: {}]   ;;  %s2778_s3 = inlined_call_operand.vmem [shape: f32[1,64], index: 3, kind: input, shape index: {}]   ;;  %s2779_s4 = inlined_call_operand.vmem [shape: f32[2048,64], index: 4, kind: output, shape index: {}]  }
   0x1   :  { %s1964_s17 = smov 0  }
   0x2 LB: > { %s33_s18 = sadd.s32 1, %s1928_s16  ;;  %p1769_p0 = scmp.ge.s32.totalorder %s1932_s17, 1  ;;  %s1932_s17 = sphi %s1964_s17, %s14_s17   ;;  %s1928_s16 = sphi %s1962_s16, %s2781_s16   ;;  %s1924_s15 = sphi %s1960_s15, %s2780_s15  }
   0x3   : > { %p35_p1 = scmp.ge.s32.totalorder %s33_s18, 4  ;;  %p224_p2 = scmp.lt.s32.totalorder %s1932_s17, 5 }
   0x5   : > { %s2783_s18 = smov (%p35_p1, %s33_s18), 0  ;;  %p225_p3 = pnand %p1769_p0, %p224_p2 }
   0x6   : > { %s1770_s19 = sshll.u32 (!%p225_p3), %s1924_s15, 6 }
   0x7   : > { %228 = sbr.rel (%p225_p3) target bundleno = 387 (0x183), region = 36  ;;  %p274_p4 = scmp.lt.s32.totalorder (!%p225_p3), %s1770_s19, 255 }
   0xc   : > { %v584_v0 = vld [vmem:[%s2776_s1 + $0x78] sm:$0xff]  ;;  %v1934_v1 = vmov 0.0   ;;  %v583_v2 = vld [vmem:[%s2776_s1 + $0x70] sm:$0xff]  ;;  %v582_v3 = vld [vmem:[%s2776_s1 + $0x68] sm:$0xff]  ;;  %s2785_s19 = smov (!%p274_p4, %s1770_s19), 255  ;;  %vm781_vm0 = vcmask 1042432  }
   0xd   : > { %785 = vmatprep.subr.mxu0 %v1934_v1  ;;  %1845 = vmatprep.subr.mxu1 %v1934_v1  ;;  %v581_v4 = vld [vmem:[%s2776_s1 + $0x60] sm:$0xff]  ;;  %v580_v5 = vld [vmem:[%s2776_s1 + $0x58] sm:$0xff]  ;;  %v579_v6 = vld [vmem:[%s2776_s1 + $0x50] sm:$0xff]  ;;  %s1844_s29 = sshll.u32 %s2785_s19, 4  ;;  %vm588_vm1 = vcmask 154624   ;;  %vm312_vm2 = vcmask 523264  }
   0xe   : > { %786 = vmatpush1.msra.mxu0 %v584_v0  ;;  %1864 = vmatpush1.msra.mxu1 %v584_v0  ;;  %v578_v7 = vld [vmem:[%s2776_s1 + $0x48] sm:$0xff]  ;;  %v577_v8 = vld [vmem:[%s2776_s1 + $0x40] sm:$0xff]  ;;  %v576_v9 = vld [vmem:[%s2776_s1 + $0x38] sm:$0xff]  ;;  %s2075_s10 = scalar_lea.vmem %s2775_s0, %s1844_s29  ;;  %313 = vst.msk [vmem:[#allocation2] sm:$0xff] %vm312_vm2, %v1934_v1  ;;  %s1774_s22 = sshll.u32 %s2785_s19, 3 }
   0xf   : > { %787 = vmatprep.subr.mxu0 %v1934_v1  ;;  %1846 = vmatprep.subr.mxu1 %v1934_v1  ;;  %v575_v10 = vld [vmem:[%s2776_s1 + $0x30] sm:$0xff]  ;;  %v574_v11 = vld [vmem:[%s2776_s1 + $0x28] sm:$0xff]  ;;  %v573_v12 = vld [vmem:[%s2776_s1 + $0x20] sm:$0xff]  ;;  %314 = vst.msk [vmem:[#allocation2 + $0x8] sm:$0xff] %vm312_vm2, %v1934_v1  ;;  %s2444_s19 = scalar_lea.vmem %s2779_s4, %s1774_s22 }
  0x10   : > { %788 = vmatpush1.msra.mxu0 %v583_v2  ;;  %1865 = vmatpush1.msra.mxu1 %v583_v2  ;;  %v572_v13 = vld [vmem:[%s2776_s1 + $0x18] sm:$0xff]  ;;  %v571_v14 = vld [vmem:[%s2776_s1 + $0x10] sm:$0xff]  ;;  %v570_v15 = vld [vmem:[%s2776_s1 + $0x8] sm:$0xff]  ;;  %315 = vst.msk [vmem:[#allocation2 + $0x10] sm:$0xff] %vm312_vm2, %v1934_v1 }
  0x11   : > { %789 = vmatprep.subr.mxu0 %v1934_v1  ;;  %1847 = vmatprep.subr.mxu1 %v1934_v1  ;;  %v569_v16 = vld [vmem:[%s2776_s1] sm:$0xff]  ;;  %v587_v17 = vld [vmem:[%s2776_s1 + $0x90] sm:$0x7]  ;;  %v586_v18 = vld [vmem:[%s2776_s1 + $0x88] sm:$0xff]  ;;  %316 = vst.msk [vmem:[#allocation2 + $0x18] sm:$0xff] %vm312_vm2, %v1934_v1 }
  0x12   : > { %790 = vmatpush1.msra.mxu0 %v582_v3  ;;  %1866 = vmatpush1.msra.mxu1 %v582_v3  ;;  %v2082_v19 = vld [vmem:[%s2776_s1 + $0x80] sm:$0xff]  ;;  %v2085_v20 = vld [vmem:[%s2075_s10 + $0x8] sm:$0xff]  ;;  %317 = vst.msk [vmem:[#allocation2 + $0x20] sm:$0xff] %vm312_vm2, %v1934_v1  ;;  %318 = vst.msk [vmem:[#allocation2 + $0x28] sm:$0xff] %vm312_vm2, %v1934_v1 }
  0x13   : > { %791 = vmatprep.subr.mxu0 %v1934_v1  ;;  %1848 = vmatprep.subr.mxu1 %v1934_v1  ;;  %v2088_v21 = vld [vmem:[%s2075_s10 + $0x208] sm:$0xff]  ;;  %v2093_v22 = vld [vmem:[%s2075_s10] sm:$0xff]  ;;  %319 = vst.msk [vmem:[#allocation2 + $0x30] sm:$0xff] %vm312_vm2, %v1934_v1  ;;  %320 = vst.msk [vmem:[#allocation2 + $0x38] sm:$0xff] %vm312_vm2, %v1934_v1 }
  0x14   : > { %792 = vmatpush1.msra.mxu0 %v581_v4  ;;  %1867 = vmatpush1.msra.mxu1 %v581_v4  ;;  %v2096_v23 = vld [vmem:[%s2075_s10 + $0x200] sm:$0xff]  ;;  %321 = vst.msk [vmem:[#allocation2 + $0x40] sm:$0xff] %vm312_vm2, %v1934_v1  ;;  %322 = vst.msk [vmem:[#allocation2 + $0x48] sm:$0xff] %vm312_vm2, %v1934_v1  ;;  %v444_v24 = vld [vmem:[%s2075_s10 + $0x18] sm:$0xff] }
  0x15   : > { %793 = vmatprep.subr.mxu0 %v1934_v1  ;;  %1849 = vmatprep.subr.mxu1 %v1934_v1  ;;  %323 = vst.msk [vmem:[#allocation2 + $0x50] sm:$0xff] %vm312_vm2, %v1934_v1  ;;  %324 = vst.msk [vmem:[#allocation2 + $0x58] sm:$0xff] %vm312_vm2, %v1934_v1  ;;  %v508_v25 = vld [vmem:[%s2075_s10 + $0x218] sm:$0xff]  ;;  %v443_v26 = vld [vmem:[%s2075_s10 + $0x10] sm:$0xff] }
  0x16   : > { %794 = vmatpush1.msra.mxu0 %v580_v5  ;;  %1868 = vmatpush1.msra.mxu1 %v580_v5  ;;  %325 = vst.msk [vmem:[#allocation2 + $0x60] sm:$0xff] %vm312_vm2, %v1934_v1  ;;  %326 = vst.msk [vmem:[#allocation2 + $0x68] sm:$0xff] %vm312_vm2, %v1934_v1  ;;  %v507_v27 = vld [vmem:[%s2075_s10 + $0x210] sm:$0xff]  ;;  %v446_v28 = vld [vmem:[%s2075_s10 + $0x28] sm:$0xff] }
  0x17   : > { %795 = vmatprep.subr.mxu0 %v1934_v1  ;;  %1850 = vmatprep.subr.mxu1 %v1934_v1  ;;  %327 = vst.msk [vmem:[#allocation2 + $0x70] sm:$0xff] %vm312_vm2, %v1934_v1  ;;  %328 = vst.msk [vmem:[#allocation2 + $0x78] sm:$0xff] %vm312_vm2, %v1934_v1  ;;  %v510_v29 = vld [vmem:[%s2075_s10 + $0x228] sm:$0xff]  ;;  %v445_v30 = vld [vmem:[%s2075_s10 + $0x20] sm:$0xff] }
  0x18   : > { %796 = vmatpush1.msra.mxu0 %v579_v6  ;;  %1869 = vmatpush1.msra.mxu1 %v579_v6  ;;  %329 = vst.msk [vmem:[#allocation2 + $0x80] sm:$0xff] %vm312_vm2, %v1934_v1  ;;  %330 = vst.msk [vmem:[#allocation2 + $0x88] sm:$0xff] %vm312_vm2, %v1934_v1  ;;  %v509_v31 = vld [vmem:[%s2075_s10 + $0x220] sm:$0xff]  ;;  %v448_v32 = vld [vmem:[%s2075_s10 + $0x38] sm:$0xff] }
  0x19   : > { %797 = vmatprep.subr.mxu0 %v1934_v1  ;;  %1851 = vmatprep.subr.mxu1 %v1934_v1  ;;  %331 = vst.msk [vmem:[#allocation2 + $0x90] sm:$0xff] %vm312_vm2, %v1934_v1  ;;  %332 = vst.msk [vmem:[#allocation2 + $0x98] sm:$0xff] %vm312_vm2, %v1934_v1  ;;  %v512_v33 = vld [vmem:[%s2075_s10 + $0x238] sm:$0xff]  ;;  %v447_v34 = vld [vmem:[%s2075_s10 + $0x30] sm:$0xff] }
  0x1a   : > { %798 = vmatpush1.msra.mxu0 %v578_v7  ;;  %1870 = vmatpush1.msra.mxu1 %v578_v7  ;;  %333 = vst.msk [vmem:[#allocation2 + $0xa0] sm:$0xff] %vm312_vm2, %v1934_v1  ;;  %334 = vst.msk [vmem:[#allocation2 + $0xa8] sm:$0xff] %vm312_vm2, %v1934_v1  ;;  %v511_v35 = vld [vmem:[%s2075_s10 + $0x230] sm:$0xff]  ;;  %v450_v36 = vld [vmem:[%s2075_s10 + $0x48] sm:$0xff] }
  0x1b   : > { %799 = vmatprep.subr.mxu0 %v1934_v1  ;;  %1852 = vmatprep.subr.mxu1 %v1934_v1  ;;  %335 = vst.msk [vmem:[#allocation2 + $0xb0] sm:$0xff] %vm312_vm2, %v1934_v1  ;;  %336 = vst.msk [vmem:[#allocation2 + $0xb8] sm:$0xff] %vm312_vm2, %v1934_v1  ;;  %v514_v37 = vld [vmem:[%s2075_s10 + $0x248] sm:$0xff]  ;;  %v449_v38 = vld [vmem:[%s2075_s10 + $0x40] sm:$0xff] }
  0x1c   : > { %800 = vmatpush1.msra.mxu0 %v577_v8  ;;  %1871 = vmatpush1.msra.mxu1 %v577_v8  ;;  %337 = vst.msk [vmem:[#allocation2 + $0xc0] sm:$0xff] %vm312_vm2, %v1934_v1  ;;  %338 = vst.msk [vmem:[#allocation2 + $0xc8] sm:$0xff] %vm312_vm2, %v1934_v1  ;;  %v513_v39 = vld [vmem:[%s2075_s10 + $0x240] sm:$0xff]  ;;  %v452_v40 = vld [vmem:[%s2075_s10 + $0x58] sm:$0xff] }
  0x1d   : > { %801 = vmatprep.subr.mxu0 %v1934_v1  ;;  %1853 = vmatprep.subr.mxu1 %v1934_v1  ;;  %339 = vst.msk [vmem:[#allocation2 + $0xd0] sm:$0xff] %vm312_vm2, %v1934_v1  ;;  %340 = vst.msk [vmem:[#allocation2 + $0xd8] sm:$0xff] %vm312_vm2, %v1934_v1  ;;  %v516_v41 = vld [vmem:[%s2075_s10 + $0x258] sm:$0xff]  ;;  %v451_v42 = vld [vmem:[%s2075_s10 + $0x50] sm:$0xff] }
  0x1e   : > { %802 = vmatpush1.msra.mxu0 %v576_v9  ;;  %1872 = vmatpush1.msra.mxu1 %v576_v9  ;;  %341 = vst.msk [vmem:[#allocation2 + $0xe0] sm:$0xff] %vm312_vm2, %v1934_v1  ;;  %342 = vst.msk [vmem:[#allocation2 + $0xe8] sm:$0xff] %vm312_vm2, %v1934_v1  ;;  %v515_v43 = vld [vmem:[%s2075_s10 + $0x250] sm:$0xff]  ;;  %v454_v44 = vld [vmem:[%s2075_s10 + $0x68] sm:$0xff] }
  0x1f   : > { %803 = vmatprep.subr.mxu0 %v1934_v1  ;;  %1854 = vmatprep.subr.mxu1 %v1934_v1  ;;  %343 = vst.msk [vmem:[#allocation2 + $0xf0] sm:$0xff] %vm312_vm2, %v1934_v1  ;;  %344 = vst.msk [vmem:[#allocation2 + $0xf8] sm:$0xff] %vm312_vm2, %v1934_v1  ;;  %v518_v45 = vld [vmem:[%s2075_s10 + $0x268] sm:$0xff]  ;;  %v453_v46 = vld [vmem:[%s2075_s10 + $0x60] sm:$0xff] }
  0x20   : > { %804 = vmatpush1.msra.mxu0 %v575_v10  ;;  %1873 = vmatpush1.msra.mxu1 %v575_v10  ;;  %345 = vst.msk [vmem:[#allocation2 + $0x100] sm:$0xff] %vm312_vm2, %v1934_v1  ;;  %346 = vst.msk [vmem:[#allocation2 + $0x108] sm:$0xff] %vm312_vm2, %v1934_v1  ;;  %v517_v47 = vld [vmem:[%s2075_s10 + $0x260] sm:$0xff]  ;;  %v456_v48 = vld [vmem:[%s2075_s10 + $0x78] sm:$0xff] }
  0x21   : > { %805 = vmatprep.subr.mxu0 %v1934_v1  ;;  %1855 = vmatprep.subr.mxu1 %v1934_v1  ;;  %347 = vst.msk [vmem:[#allocation2 + $0x110] sm:$0xff] %vm312_vm2, %v1934_v1  ;;  %348 = vst.msk [vmem:[#allocation2 + $0x118] sm:$0xff] %vm312_vm2, %v1934_v1  ;;  %v520_v49 = vld [vmem:[%s2075_s10 + $0x278] sm:$0xff]  ;;  %v455_v50 = vld [vmem:[%s2075_s10 + $0x70] sm:$0xff] }
  0x22   : > { %806 = vmatpush1.msra.mxu0 %v574_v11  ;;  %1874 = vmatpush1.msra.mxu1 %v574_v11  ;;  %349 = vst.msk [vmem:[#allocation2 + $0x120] sm:$0xff] %vm312_vm2, %v1934_v1  ;;  %350 = vst.msk [vmem:[#allocation2 + $0x128] sm:$0xff] %vm312_vm2, %v1934_v1  ;;  %v519_v51 = vld [vmem:[%s2075_s10 + $0x270] sm:$0xff]  ;;  %v458_v52 = vld [vmem:[%s2075_s10 + $0x88] sm:$0xff] }
  0x23   : > { %807 = vmatprep.subr.mxu0 %v1934_v1  ;;  %1856 = vmatprep.subr.mxu1 %v1934_v1  ;;  %351 = vst.msk [vmem:[#allocation2 + $0x130] sm:$0xff] %vm312_vm2, %v1934_v1  ;;  %352 = vst.msk [vmem:[#allocation2 + $0x138] sm:$0xff] %vm312_vm2, %v1934_v1  ;;  %v522_v53 = vld [vmem:[%s2075_s10 + $0x288] sm:$0xff]  ;;  %v457_v54 = vld [vmem:[%s2075_s10 + $0x80] sm:$0xff] }
  0x24   : > { %808 = vmatpush1.msra.mxu0 %v573_v12  ;;  %1875 = vmatpush1.msra.mxu1 %v573_v12  ;;  %353 = vst.msk [vmem:[#allocation2 + $0x140] sm:$0xff] %vm312_vm2, %v1934_v1  ;;  %354 = vst.msk [vmem:[#allocation2 + $0x148] sm:$0xff] %vm312_vm2, %v1934_v1  ;;  %v521_v55 = vld [vmem:[%s2075_s10 + $0x280] sm:$0xff]  ;;  %v460_v56 = vld [vmem:[%s2075_s10 + $0x98] sm:$0xff] }
  0x25   : > { %809 = vmatprep.subr.mxu0 %v1934_v1  ;;  %1857 = vmatprep.subr.mxu1 %v1934_v1  ;;  %355 = vst.msk [vmem:[#allocation2 + $0x150] sm:$0xff] %vm312_vm2, %v1934_v1  ;;  %356 = vst.msk [vmem:[#allocation2 + $0x158] sm:$0xff] %vm312_vm2, %v1934_v1  ;;  %v524_v57 = vld [vmem:[%s2075_s10 + $0x298] sm:$0xff]  ;;  %v459_v58 = vld [vmem:[%s2075_s10 + $0x90] sm:$0xff] }
  0x26   : > { %810 = vmatpush1.msra.mxu0 %v572_v13  ;;  %1876 = vmatpush1.msra.mxu1 %v572_v13  ;;  %357 = vst.msk [vmem:[#allocation2 + $0x160] sm:$0xff] %vm312_vm2, %v1934_v1  ;;  %358 = vst.msk [vmem:[#allocation2 + $0x168] sm:$0xff] %vm312_vm2, %v1934_v1  ;;  %v523_v59 = vld [vmem:[%s2075_s10 + $0x290] sm:$0xff]  ;;  %v462_v60 = vld [vmem:[%s2075_s10 + $0xa8] sm:$0xff] }
  0x27   : > { %811 = vmatprep.subr.mxu0 %v1934_v1  ;;  %1858 = vmatprep.subr.mxu1 %v1934_v1  ;;  %359 = vst.msk [vmem:[#allocation2 + $0x170] sm:$0xff] %vm312_vm2, %v1934_v1  ;;  %360 = vst.msk [vmem:[#allocation2 + $0x178] sm:$0xff] %vm312_vm2, %v1934_v1  ;;  %v526_v61 = vld [vmem:[%s2075_s10 + $0x2a8] sm:$0xff]  ;;  %v461_v62 = vld [vmem:[%s2075_s10 + $0xa0] sm:$0xff] }
  0x28   : > { %812 = vmatpush1.msra.mxu0 %v571_v14  ;;  %1877 = vmatpush1.msra.mxu1 %v571_v14  ;;  %361 = vst.msk [vmem:[#allocation2 + $0x180] sm:$0xff] %vm312_vm2, %v1934_v1  ;;  %362 = vst.msk [vmem:[#allocation2 + $0x188] sm:$0xff] %vm312_vm2, %v1934_v1  ;;  %v525_v63 = vld [vmem:[%s2075_s10 + $0x2a0] sm:$0xff]  ;;  %v464_v0 = vld [vmem:[%s2075_s10 + $0xb8] sm:$0xff] }
  0x29   : > { %813 = vmatprep.subr.mxu0 %v1934_v1  ;;  %1859 = vmatprep.subr.mxu1 %v1934_v1  ;;  %363 = vst.msk [vmem:[#allocation2 + $0x190] sm:$0xff] %vm312_vm2, %v1934_v1  ;;  %364 = vst.msk [vmem:[#allocation2 + $0x198] sm:$0xff] %vm312_vm2, %v1934_v1  ;;  %v463_v2 = vld [vmem:[%s2075_s10 + $0xb0] sm:$0xff]  ;;  %v466_v4 = vld [vmem:[%s2075_s10 + $0xc8] sm:$0xff] }
  0x2a   : > { %814 = vmatpush1.msra.mxu0 %v570_v15  ;;  %1878 = vmatpush1.msra.mxu1 %v570_v15  ;;  %365 = vst.msk [vmem:[#allocation2 + $0x1a0] sm:$0xff] %vm312_vm2, %v1934_v1  ;;  %366 = vst.msk [vmem:[#allocation2 + $0x1a8] sm:$0xff] %vm312_vm2, %v1934_v1  ;;  %v527_v3 = vld [vmem:[%s2075_s10 + $0x2b0] sm:$0xff]  ;;  %v530_v5 = vld [vmem:[%s2075_s10 + $0x2c8] sm:$0xff] }
  0x2b   : > { %815 = vmatprep.subr.mxu0 %v1934_v1  ;;  %1860 = vmatprep.subr.mxu1 %v1934_v1  ;;  %367 = vst.msk [vmem:[#allocation2 + $0x1b0] sm:$0xff] %vm312_vm2, %v1934_v1  ;;  %368 = vst.msk [vmem:[#allocation2 + $0x1b8] sm:$0xff] %vm312_vm2, %v1934_v1  ;;  %v465_v6 = vld [vmem:[%s2075_s10 + $0xc0] sm:$0xff]  ;;  %v468_v8 = vld [vmem:[%s2075_s10 + $0xd8] sm:$0xff] }
  0x2c   : > { %816 = vmatpush1.msra.mxu0 %v569_v16  ;;  %1879 = vmatpush1.msra.mxu1 %v569_v16  ;;  %369 = vst.msk [vmem:[#allocation2 + $0x1c0] sm:$0xff] %vm312_vm2, %v1934_v1  ;;  %370 = vst.msk [vmem:[#allocation2 + $0x1c8] sm:$0xff] %vm312_vm2, %v1934_v1  ;;  %v529_v7 = vld [vmem:[%s2075_s10 + $0x2c0] sm:$0xff]  ;;  %v532_v9 = vld [vmem:[%s2075_s10 + $0x2d8] sm:$0xff] }
  0x2d   : > { %843 = vmatprep.subr.mxu0 %v1934_v1  ;;  %1861 = vmatprep.subr.mxu1 %v1934_v1  ;;  %371 = vst.msk [vmem:[#allocation2 + $0x1d0] sm:$0xff] %vm312_vm2, %v1934_v1  ;;  %372 = vst.msk [vmem:[#allocation2 + $0x1d8] sm:$0xff] %vm312_vm2, %v1934_v1  ;;  %v467_v10 = vld [vmem:[%s2075_s10 + $0xd0] sm:$0xff]  ;;  %v470_v12 = vld [vmem:[%s2075_s10 + $0xe8] sm:$0xff] }
  0x2e   : > { %1775 = vmatpush2.msk.msra.mxu0 %vm781_vm0, %v587_v17  ;;  %1880 = vmatpush2.msk.msra.mxu1 %vm781_vm0, %v587_v17  ;;  %373 = vst.msk [vmem:[#allocation2 + $0x1e0] sm:$0xff] %vm312_vm2, %v1934_v1  ;;  %374 = vst.msk [vmem:[#allocation2 + $0x1e8] sm:$0xff] %vm312_vm2, %v1934_v1  ;;  %v531_v11 = vld [vmem:[%s2075_s10 + $0x2d0] sm:$0xff]  ;;  %v534_v13 = vld [vmem:[%s2075_s10 + $0x2e8] sm:$0xff] }
  0x2f   : > { %845 = vmatprep.subr.mxu0 %v1934_v1  ;;  %1862 = vmatprep.subr.mxu1 %v1934_v1  ;;  %375 = vst.msk [vmem:[#allocation2 + $0x1f0] sm:$0xff] %vm312_vm2, %v1934_v1  ;;  %376 = vst.msk [vmem:[#allocation2 + $0x1f8] sm:$0xff] %vm312_vm2, %v1934_v1  ;;  %v469_v14 = vld [vmem:[%s2075_s10 + $0xe0] sm:$0xff]  ;;  %v472_v16 = vld [vmem:[%s2075_s10 + $0xf8] sm:$0xff] }
  0x30   : > { %846 = vmatpush2.msra.mxu0 %v586_v18  ;;  %1881 = vmatpush2.msra.mxu1 %v586_v18  ;;  %v533_v15 = vld [vmem:[%s2075_s10 + $0x2e0] sm:$0xff]  ;;  %v536_v17 = vld [vmem:[%s2075_s10 + $0x2f8] sm:$0xff]  ;;  %v471_v18 = vld [vmem:[%s2075_s10 + $0xf0] sm:$0xff] }
  0x31   : > { %847 = vmatprep.subr.mxu0 %v1934_v1  ;;  %1863 = vmatprep.subr.mxu1 %v1934_v1  ;;  %v528_v1 = vld [vmem:[%s2075_s10 + $0x2b8] sm:$0xff] }
  0x32   : > { %848 = vmatpush2.msra.mxu0 %v2082_v19  ;;  %1882 = vmatpush2.msra.mxu1 %v2082_v19  ;;  %v535_v19 = vld [vmem:[%s2075_s10 + $0x2f0] sm:$0xff] }
  0x33   : > { %1776 = vmatprep.mubr.msk.f32.mxu0 %vm588_vm1, %v2085_v20  ;;  %1808 = vmatprep.mubr.msk.f32.mxu1 %vm588_vm1, %v2088_v21  ;;  %v474_v20 = vld [vmem:[%s2075_s10 + $0x108] sm:$0xff] }
  0x34   : > { %850 = vmatmul.mubr.f32.vlgmr.msra.gmra.mxu0 %v2093_v22  ;;  %1010 = vmatmul.mubr.f32.vlgmr.msra.gmra.mxu1 %v2096_v23  ;;  %v538_v21 = vld [vmem:[%s2075_s10 + $0x308] sm:$0xff]  ;;  %v473_v22 = vld [vmem:[%s2075_s10 + $0x100] sm:$0xff] }
  0x35   : > { %1777 = vmatprep.mubr.msk.f32.mxu0 %vm588_vm1, %v444_v24  ;;  %1809 = vmatprep.mubr.msk.f32.mxu1 %vm588_vm1, %v508_v25  ;;  %v537_v23 = vld [vmem:[%s2075_s10 + $0x300] sm:$0xff]  ;;  %v476_v24 = vld [vmem:[%s2075_s10 + $0x118] sm:$0xff] }
  0x36   : > { %v540_v25 = vld [vmem:[%s2075_s10 + $0x318] sm:$0xff] }
  0x38   : > { %855 = vmatmul.mubr.f32.gmra.mxu0 %v443_v26  ;;  %1015 = vmatmul.mubr.f32.gmra.mxu1 %v507_v27  ;;  %v475_v26 = vld [vmem:[%s2075_s10 + $0x110] sm:$0xff] }
  0x39   : > { %1778 = vmatprep.mubr.msk.f32.mxu0 %vm588_vm1, %v446_v28  ;;  %1810 = vmatprep.mubr.msk.f32.mxu1 %vm588_vm1, %v510_v29  ;;  %v539_v27 = vld [vmem:[%s2075_s10 + $0x310] sm:$0xff]  ;;  %v478_v28 = vld [vmem:[%s2075_s10 + $0x128] sm:$0xff] }
  0x3a   : > { %v542_v29 = vld [vmem:[%s2075_s10 + $0x328] sm:$0xff] }
  0x3c   : > { %860 = vmatmul.mubr.f32.gmra.mxu0 %v445_v30  ;;  %1020 = vmatmul.mubr.f32.gmra.mxu1 %v509_v31  ;;  %v477_v30 = vld [vmem:[%s2075_s10 + $0x120] sm:$0xff] }
  0x3d   : > { %1779 = vmatprep.mubr.msk.f32.mxu0 %vm588_vm1, %v448_v32  ;;  %1811 = vmatprep.mubr.msk.f32.mxu1 %vm588_vm1, %v512_v33  ;;  %v541_v31 = vld [vmem:[%s2075_s10 + $0x320] sm:$0xff]  ;;  %v480_v32 = vld [vmem:[%s2075_s10 + $0x138] sm:$0xff] }
  0x3e   : > { %v544_v33 = vld [vmem:[%s2075_s10 + $0x338] sm:$0xff] }
  0x40   : > { %865 = vmatmul.mubr.f32.gmra.mxu0 %v447_v34  ;;  %1025 = vmatmul.mubr.f32.gmra.mxu1 %v511_v35  ;;  %v479_v34 = vld [vmem:[%s2075_s10 + $0x130] sm:$0xff] }
  0x41   : > { %1780 = vmatprep.mubr.msk.f32.mxu0 %vm588_vm1, %v450_v36  ;;  %1812 = vmatprep.mubr.msk.f32.mxu1 %vm588_vm1, %v514_v37  ;;  %v543_v35 = vld [vmem:[%s2075_s10 + $0x330] sm:$0xff]  ;;  %v482_v36 = vld [vmem:[%s2075_s10 + $0x148] sm:$0xff] }
  0x42   : > { %v546_v37 = vld [vmem:[%s2075_s10 + $0x348] sm:$0xff] }
  0x44   : > { %870 = vmatmul.mubr.f32.gmra.mxu0 %v449_v38  ;;  %1030 = vmatmul.mubr.f32.gmra.mxu1 %v513_v39  ;;  %v481_v38 = vld [vmem:[%s2075_s10 + $0x140] sm:$0xff] }
  0x45   : > { %1781 = vmatprep.mubr.msk.f32.mxu0 %vm588_vm1, %v452_v40  ;;  %1813 = vmatprep.mubr.msk.f32.mxu1 %vm588_vm1, %v516_v41  ;;  %v545_v39 = vld [vmem:[%s2075_s10 + $0x340] sm:$0xff]  ;;  %v484_v40 = vld [vmem:[%s2075_s10 + $0x158] sm:$0xff] }
  0x46   : > { %v548_v41 = vld [vmem:[%s2075_s10 + $0x358] sm:$0xff] }
  0x48   : > { %875 = vmatmul.mubr.f32.gmra.mxu0 %v451_v42  ;;  %1035 = vmatmul.mubr.f32.gmra.mxu1 %v515_v43  ;;  %v483_v42 = vld [vmem:[%s2075_s10 + $0x150] sm:$0xff] }
  0x49   : > { %1782 = vmatprep.mubr.msk.f32.mxu0 %vm588_vm1, %v454_v44  ;;  %1814 = vmatprep.mubr.msk.f32.mxu1 %vm588_vm1, %v518_v45  ;;  %v547_v43 = vld [vmem:[%s2075_s10 + $0x350] sm:$0xff]  ;;  %v486_v44 = vld [vmem:[%s2075_s10 + $0x168] sm:$0xff] }
  0x4a   : > { %v550_v45 = vld [vmem:[%s2075_s10 + $0x368] sm:$0xff] }
  0x4c   : > { %880 = vmatmul.mubr.f32.gmra.mxu0 %v453_v46  ;;  %1040 = vmatmul.mubr.f32.gmra.mxu1 %v517_v47  ;;  %v485_v46 = vld [vmem:[%s2075_s10 + $0x160] sm:$0xff] }
  0x4d   : > { %1783 = vmatprep.mubr.msk.f32.mxu0 %vm588_vm1, %v456_v48  ;;  %1815 = vmatprep.mubr.msk.f32.mxu1 %vm588_vm1, %v520_v49  ;;  %v549_v47 = vld [vmem:[%s2075_s10 + $0x360] sm:$0xff]  ;;  %v488_v48 = vld [vmem:[%s2075_s10 + $0x178] sm:$0xff] }
  0x4e   : > { %v552_v49 = vld [vmem:[%s2075_s10 + $0x378] sm:$0xff] }
  0x50   : > { %885 = vmatmul.mubr.f32.gmra.mxu0 %v455_v50  ;;  %1045 = vmatmul.mubr.f32.gmra.mxu1 %v519_v51  ;;  %v487_v50 = vld [vmem:[%s2075_s10 + $0x170] sm:$0xff] }
  0x51   : > { %1784 = vmatprep.mubr.msk.f32.mxu0 %vm588_vm1, %v458_v52  ;;  %1816 = vmatprep.mubr.msk.f32.mxu1 %vm588_vm1, %v522_v53  ;;  %v551_v51 = vld [vmem:[%s2075_s10 + $0x370] sm:$0xff]  ;;  %v490_v52 = vld [vmem:[%s2075_s10 + $0x188] sm:$0xff] }
  0x52   : > { %v554_v53 = vld [vmem:[%s2075_s10 + $0x388] sm:$0xff] }
  0x54   : > { %890 = vmatmul.mubr.f32.gmra.mxu0 %v457_v54  ;;  %1050 = vmatmul.mubr.f32.gmra.mxu1 %v521_v55  ;;  %v489_v54 = vld [vmem:[%s2075_s10 + $0x180] sm:$0xff] }
  0x55   : > { %1785 = vmatprep.mubr.msk.f32.mxu0 %vm588_vm1, %v460_v56  ;;  %1817 = vmatprep.mubr.msk.f32.mxu1 %vm588_vm1, %v524_v57  ;;  %v553_v55 = vld [vmem:[%s2075_s10 + $0x380] sm:$0xff]  ;;  %v492_v56 = vld [vmem:[%s2075_s10 + $0x198] sm:$0xff] }
  0x56   : > { %v556_v57 = vld [vmem:[%s2075_s10 + $0x398] sm:$0xff] }
  0x58   : > { %895 = vmatmul.mubr.f32.gmra.mxu0 %v459_v58  ;;  %1055 = vmatmul.mubr.f32.gmra.mxu1 %v523_v59  ;;  %v491_v58 = vld [vmem:[%s2075_s10 + $0x190] sm:$0xff] }
  0x59   : > { %1786 = vmatprep.mubr.msk.f32.mxu0 %vm588_vm1, %v462_v60  ;;  %1818 = vmatprep.mubr.msk.f32.mxu1 %vm588_vm1, %v526_v61  ;;  %v555_v59 = vld [vmem:[%s2075_s10 + $0x390] sm:$0xff]  ;;  %v494_v60 = vld [vmem:[%s2075_s10 + $0x1a8] sm:$0xff] }
  0x5a   : > { %v558_v61 = vld [vmem:[%s2075_s10 + $0x3a8] sm:$0xff] }
  0x5c   : > { %900 = vmatmul.mubr.f32.gmra.mxu0 %v461_v62  ;;  %1060 = vmatmul.mubr.f32.gmra.mxu1 %v525_v63  ;;  %v493_v62 = vld [vmem:[%s2075_s10 + $0x1a0] sm:$0xff] }
  0x5d   : > { %1787 = vmatprep.mubr.msk.f32.mxu0 %vm588_vm1, %v464_v0  ;;  %1819 = vmatprep.mubr.msk.f32.mxu1 %vm588_vm1, %v528_v1  ;;  %v557_v63 = vld [vmem:[%s2075_s10 + $0x3a0] sm:$0xff]  ;;  %v496_v0 = vld [vmem:[%s2075_s10 + $0x1b8] sm:$0xff] }
  0x5e   : > { %v560_v1 = vld [vmem:[%s2075_s10 + $0x3b8] sm:$0xff] }
  0x60   : > { %905 = vmatmul.mubr.f32.gmra.mxu0 %v463_v2  ;;  %1065 = vmatmul.mubr.f32.gmra.mxu1 %v527_v3  ;;  %v495_v2 = vld [vmem:[%s2075_s10 + $0x1b0] sm:$0xff] }
  0x61   : > { %1788 = vmatprep.mubr.msk.f32.mxu0 %vm588_vm1, %v466_v4  ;;  %1820 = vmatprep.mubr.msk.f32.mxu1 %vm588_vm1, %v530_v5  ;;  %v559_v3 = vld [vmem:[%s2075_s10 + $0x3b0] sm:$0xff]  ;;  %v498_v4 = vld [vmem:[%s2075_s10 + $0x1c8] sm:$0xff] }
  0x62   : > { %v562_v5 = vld [vmem:[%s2075_s10 + $0x3c8] sm:$0xff] }
  0x64   : > { %910 = vmatmul.mubr.f32.gmra.mxu0 %v465_v6  ;;  %1070 = vmatmul.mubr.f32.gmra.mxu1 %v529_v7  ;;  %v497_v6 = vld [vmem:[%s2075_s10 + $0x1c0] sm:$0xff] }
  0x65   : > { %1789 = vmatprep.mubr.msk.f32.mxu0 %vm588_vm1, %v468_v8  ;;  %1821 = vmatprep.mubr.msk.f32.mxu1 %vm588_vm1, %v532_v9  ;;  %v561_v7 = vld [vmem:[%s2075_s10 + $0x3c0] sm:$0xff]  ;;  %v500_v8 = vld [vmem:[%s2075_s10 + $0x1d8] sm:$0xff] }
  0x66   : > { %v564_v9 = vld [vmem:[%s2075_s10 + $0x3d8] sm:$0xff] }
  0x68   : > { %915 = vmatmul.mubr.f32.gmra.mxu0 %v467_v10  ;;  %1075 = vmatmul.mubr.f32.gmra.mxu1 %v531_v11  ;;  %v499_v10 = vld [vmem:[%s2075_s10 + $0x1d0] sm:$0xff] }
  0x69   : > { %1790 = vmatprep.mubr.msk.f32.mxu0 %vm588_vm1, %v470_v12  ;;  %1822 = vmatprep.mubr.msk.f32.mxu1 %vm588_vm1, %v534_v13  ;;  %v563_v11 = vld [vmem:[%s2075_s10 + $0x3d0] sm:$0xff]  ;;  %v502_v12 = vld [vmem:[%s2075_s10 + $0x1e8] sm:$0xff] }
  0x6a   : > { %v566_v13 = vld [vmem:[%s2075_s10 + $0x3e8] sm:$0xff] }
  0x6c   : > { %920 = vmatmul.mubr.f32.gmra.mxu0 %v469_v14  ;;  %1080 = vmatmul.mubr.f32.gmra.mxu1 %v533_v15  ;;  %v501_v14 = vld [vmem:[%s2075_s10 + $0x1e0] sm:$0xff] }
  0x6d   : > { %1791 = vmatprep.mubr.msk.f32.mxu0 %vm588_vm1, %v472_v16  ;;  %1823 = vmatprep.mubr.msk.f32.mxu1 %vm588_vm1, %v536_v17  ;;  %v565_v15 = vld [vmem:[%s2075_s10 + $0x3e0] sm:$0xff]  ;;  %v504_v16 = vld [vmem:[%s2075_s10 + $0x1f8] sm:$0xff] }
  0x6e   : > { %v568_v17 = vld [vmem:[%s2075_s10 + $0x3f8] sm:$0xff] }
  0x70   : > { %925 = vmatmul.mubr.f32.gmra.mxu0 %v471_v18  ;;  %1085 = vmatmul.mubr.f32.gmra.mxu1 %v535_v19  ;;  %v503_v18 = vld [vmem:[%s2075_s10 + $0x1f0] sm:$0xff] }
  0x71   : > { %1792 = vmatprep.mubr.msk.f32.mxu0 %vm588_vm1, %v474_v20  ;;  %1824 = vmatprep.mubr.msk.f32.mxu1 %vm588_vm1, %v538_v21  ;;  %v567_v19 = vld [vmem:[%s2075_s10 + $0x3f0] sm:$0xff]  ;;  %v377_v20 = vld [vmem:[#allocation2] sm:$0xff] }
  0x72   : > { %v409_v21 = vld [vmem:[#allocation2 + $0x100] sm:$0xff] }
  0x74   : > { %930 = vmatmul.mubr.f32.gmra.mxu0 %v473_v22  ;;  %1090 = vmatmul.mubr.f32.gmra.mxu1 %v537_v23 }
  0x75   : > { %1793 = vmatprep.mubr.msk.f32.mxu0 %vm588_vm1, %v476_v24  ;;  %1825 = vmatprep.mubr.msk.f32.mxu1 %vm588_vm1, %v540_v25 }
  0x78   : > { %935 = vmatmul.mubr.f32.gmra.mxu0 %v475_v26  ;;  %1095 = vmatmul.mubr.f32.gmra.mxu1 %v539_v27 }
  0x79   : > { %1794 = vmatprep.mubr.msk.f32.mxu0 %vm588_vm1, %v478_v28  ;;  %1826 = vmatprep.mubr.msk.f32.mxu1 %vm588_vm1, %v542_v29  ;;  %v378_v28 = vld [vmem:[#allocation2 + $0x8] sm:$0xff] }
  0x7a   : > { %v410_v29 = vld [vmem:[#allocation2 + $0x108] sm:$0xff] }
  0x7c   : > { %940 = vmatmul.mubr.f32.gmra.mxu0 %v477_v30  ;;  %1100 = vmatmul.mubr.f32.gmra.mxu1 %v541_v31 }
  0x7d   : > { %1795 = vmatprep.mubr.msk.f32.mxu0 %vm588_vm1, %v480_v32  ;;  %1827 = vmatprep.mubr.msk.f32.mxu1 %vm588_vm1, %v544_v33 }
  0x80   : > { %945 = vmatmul.mubr.f32.gmra.mxu0 %v479_v34  ;;  %1105 = vmatmul.mubr.f32.gmra.mxu1 %v543_v35 }
  0x81   : > { %1796 = vmatprep.mubr.msk.f32.mxu0 %vm588_vm1, %v482_v36  ;;  %1828 = vmatprep.mubr.msk.f32.mxu1 %vm588_vm1, %v546_v37  ;;  %v379_v36 = vld [vmem:[#allocation2 + $0x10] sm:$0xff] }
  0x82   : > { %v411_v37 = vld [vmem:[#allocation2 + $0x110] sm:$0xff] }
  0x84   : > { %950 = vmatmul.mubr.f32.gmra.mxu0 %v481_v38  ;;  %1110 = vmatmul.mubr.f32.gmra.mxu1 %v545_v39  ;;  %v2427_v38 = vld [vmem:[%s2777_s2] ss:$0 sm:$0xff] }
  0x85   : > { %1797 = vmatprep.mubr.msk.f32.mxu0 %vm588_vm1, %v484_v40  ;;  %1829 = vmatprep.mubr.msk.f32.mxu1 %vm588_vm1, %v548_v41  ;;  %v2432_v41 = vld [vmem:[%s2778_s3] ss:$0 sm:$0xff] }
  0x88   : > { %955 = vmatmul.mubr.f32.gmra.mxu0 %v483_v42  ;;  %1115 = vmatmul.mubr.f32.gmra.mxu1 %v547_v43 }
  0x89   : > { %1798 = vmatprep.mubr.msk.f32.mxu0 %vm588_vm1, %v486_v44  ;;  %1830 = vmatprep.mubr.msk.f32.mxu1 %vm588_vm1, %v550_v45  ;;  %v380_v44 = vld [vmem:[#allocation2 + $0x18] sm:$0xff] }
  0x8c   : > { %960 = vmatmul.mubr.f32.gmra.mxu0 %v485_v46  ;;  %1120 = vmatmul.mubr.f32.gmra.mxu1 %v549_v47 }
  0x8d   : > { %1799 = vmatprep.mubr.msk.f32.mxu0 %vm588_vm1, %v488_v48  ;;  %1831 = vmatprep.mubr.msk.f32.mxu1 %vm588_vm1, %v552_v49  ;;  %v412_v49 = vld [vmem:[#allocation2 + $0x118] sm:$0xff] }
  0x90   : > { %965 = vmatmul.mubr.f32.gmra.mxu0 %v487_v50  ;;  %1125 = vmatmul.mubr.f32.gmra.mxu1 %v551_v51 }
  0x91   : > { %1800 = vmatprep.mubr.msk.f32.mxu0 %vm588_vm1, %v490_v52  ;;  %1832 = vmatprep.mubr.msk.f32.mxu1 %vm588_vm1, %v554_v53 }
  0x94   : > { %970 = vmatmul.mubr.f32.gmra.mxu0 %v489_v54  ;;  %1130 = vmatmul.mubr.f32.gmra.mxu1 %v553_v55 }
  0x95   : > { %1801 = vmatprep.mubr.msk.f32.mxu0 %vm588_vm1, %v492_v56  ;;  %1833 = vmatprep.mubr.msk.f32.mxu1 %vm588_vm1, %v556_v57 }
  0x98   : > { %975 = vmatmul.mubr.f32.gmra.mxu0 %v491_v58  ;;  %1135 = vmatmul.mubr.f32.gmra.mxu1 %v555_v59  ;;  %v381_v58 = vld [vmem:[#allocation2 + $0x20] sm:$0xff] }
  0x99   : > { %1802 = vmatprep.mubr.msk.f32.mxu0 %vm588_vm1, %v494_v60  ;;  %1834 = vmatprep.mubr.msk.f32.mxu1 %vm588_vm1, %v558_v61 }
  0x9c   : > { %980 = vmatmul.mubr.f32.gmra.mxu0 %v493_v62  ;;  %1140 = vmatmul.mubr.f32.gmra.mxu1 %v557_v63  ;;  %v413_v63 = vld [vmem:[#allocation2 + $0x120] sm:$0xff] }
  0x9d   : > { %1803 = vmatprep.mubr.msk.f32.mxu0 %vm588_vm1, %v496_v0  ;;  %1835 = vmatprep.mubr.msk.f32.mxu1 %vm588_vm1, %v560_v1 }
  0xa0   : > { %985 = vmatmul.mubr.f32.gmra.mxu0 %v495_v2  ;;  %1145 = vmatmul.mubr.f32.gmra.mxu1 %v559_v3 }
  0xa1   : > { %1804 = vmatprep.mubr.msk.f32.mxu0 %vm588_vm1, %v498_v4  ;;  %1836 = vmatprep.mubr.msk.f32.mxu1 %vm588_vm1, %v562_v5 }
  0xa4   : > { %990 = vmatmul.mubr.f32.gmra.mxu0 %v497_v6  ;;  %1150 = vmatmul.mubr.f32.gmra.mxu1 %v561_v7 }
  0xa5   : > { %1805 = vmatprep.mubr.msk.f32.mxu0 %vm588_vm1, %v500_v8  ;;  %1837 = vmatprep.mubr.msk.f32.mxu1 %vm588_vm1, %v564_v9 }
  0xa8   : > { %995 = vmatmul.mubr.f32.gmra.mxu0 %v499_v10  ;;  %1155 = vmatmul.mubr.f32.gmra.mxu1 %v563_v11  ;;  %v382_v10 = vld [vmem:[#allocation2 + $0x28] sm:$0xff] }
  0xa9   : > { %1806 = vmatprep.mubr.msk.f32.mxu0 %vm588_vm1, %v502_v12  ;;  %1838 = vmatprep.mubr.msk.f32.mxu1 %vm588_vm1, %v566_v13 }
  0xac   : > { %1000 = vmatmul.mubr.f32.gmra.mxu0 %v501_v14  ;;  %1160 = vmatmul.mubr.f32.gmra.mxu1 %v565_v15  ;;  %v414_v15 = vld [vmem:[#allocation2 + $0x128] sm:$0xff] }
  0xad   : > { %1807 = vmatprep.mubr.msk.f32.mxu0 %vm588_vm1, %v504_v16  ;;  %1839 = vmatprep.mubr.msk.f32.mxu1 %vm588_vm1, %v568_v17 }
  0xb0   : > { %1005 = vmatmul.mubr.f32.gmra.mxu0 %v503_v18  ;;  %1165 = vmatmul.mubr.f32.gmra.mxu1 %v567_v19 }
  0xf4   : > { %v851_v22 = vpop.f32.mrf.mxu0  ;;  %v1011_v23 = vpop.f32.mrf.mxu1 }
  0xf5   : > { %v1170_v24 = vadd.f32 %v851_v22, %v377_v20  ;;  %v1202_v25 = vadd.f32 %v1011_v23, %v409_v21 }
  0xf6   : > { %v853_v26 = vpop.f32.mrf.mxu0  ;;  %v1013_v27 = vpop.f32.mrf.mxu1 }
  0xf7   : > { %1235 = vst.msk [vmem:[#allocation2] sm:$0xff] %vm312_vm2, %v1170_v24  ;;  %1267 = vst.msk [vmem:[#allocation2 + $0x100] sm:$0xff] %vm312_vm2, %v1202_v25  ;;  %v383_v26 = vld [vmem:[#allocation2 + $0x30] sm:$0xff] }
  0xf8   : > { %v856_v30 = vpop.f32.mrf.mxu0  ;;  %v1016_v31 = vpop.f32.mrf.mxu1 }
  0xf9   : > { %v1171_v32 = vadd.f32 %v856_v30, %v378_v28  ;;  %v1203_v33 = vadd.f32 %v1016_v31, %v410_v29  ;;  %v415_v31 = vld [vmem:[#allocation2 + $0x130] sm:$0xff] }
  0xfa   : > { %v858_v34 = vpop.f32.mrf.mxu0  ;;  %v1018_v35 = vpop.f32.mrf.mxu1 }
  0xfb   : > { %1236 = vst.msk [vmem:[#allocation2 + $0x8] sm:$0xff] %vm312_vm2, %v1171_v32  ;;  %1268 = vst.msk [vmem:[#allocation2 + $0x108] sm:$0xff] %vm312_vm2, %v1203_v33 }
  0xfc   : > { %v861_v39 = vpop.f32.mrf.mxu0  ;;  %v1021_v40 = vpop.f32.mrf.mxu1 }
  0xfd   : > { %v1172_v42 = vadd.f32 %v861_v39, %v379_v36  ;;  %v1204_v43 = vadd.f32 %v1021_v40, %v411_v37 }
  0xfe   : > { %v1302_v45 = vld [vmem:[#allocation2] sm:$0xff]  ;;  %v863_v47 = vpop.f32.mrf.mxu0  ;;  %v1023_v48 = vpop.f32.mrf.mxu1 }
  0xff   : > { %v1334_v46 = vld [vmem:[#allocation2 + $0x100] sm:$0xff]  ;;  %v1373_v50 = vmul.f32 %v2427_v38, %v1302_v45  ;;  %1237 = vst.msk [vmem:[#allocation2 + $0x10] sm:$0xff] %vm312_vm2, %v1172_v42  ;;  %1269 = vst.msk [vmem:[#allocation2 + $0x110] sm:$0xff] %vm312_vm2, %v1204_v43 }
 0x100   : > { %v1405_v51 = vmul.f32 %v2427_v38, %v1334_v46  ;;  %v866_v52 = vpop.f32.mrf.mxu0  ;;  %v1026_v53 = vpop.f32.mrf.mxu1 }
 0x101   : > { %v1444_v54 = vadd.f32 %v2432_v41, %v1373_v50  ;;  %v1173_v56 = vadd.f32 %v866_v52, %v380_v44  ;;  %v1205_v57 = vadd.f32 %v1026_v53, %v412_v49  ;;  %v384_v44 = vld [vmem:[#allocation2 + $0x38] sm:$0xff] }
 0x102   : > { %v1476_v55 = vadd.f32 %v2432_v41, %v1405_v51  ;;  %v1303_v59 = vld [vmem:[#allocation2 + $0x8] sm:$0xff]  ;;  %v868_v61 = vpop.f32.mrf.mxu0  ;;  %v1028_v62 = vpop.f32.mrf.mxu1  ;;  %v416_v49 = vld [vmem:[#allocation2 + $0x138] sm:$0xff] }
 0x103   : > { %v1335_v60 = vld [vmem:[#allocation2 + $0x108] sm:$0xff]  ;;  %v1508_v0 = vmax.f32 %v1444_v54, 0.0  ;;  %v1374_v2 = vmul.f32 %v2427_v38, %v1303_v59  ;;  %1238 = vst.msk [vmem:[#allocation2 + $0x18] sm:$0xff] %vm312_vm2, %v1173_v56  ;;  %1270 = vst.msk [vmem:[#allocation2 + $0x118] sm:$0xff] %vm312_vm2, %v1205_v57 }
 0x104   : > { %v1540_v1 = vmax.f32 %v1476_v55, 0.0  ;;  %v1406_v3 = vmul.f32 %v2427_v38, %v1335_v60  ;;  %v871_v4 = vpop.f32.mrf.mxu0  ;;  %v1031_v5 = vpop.f32.mrf.mxu1  ;;  %v385_v60 = vld [vmem:[#allocation2 + $0x40] sm:$0xff] }
 0x105   : > { %1572 = vst.msk [vmem:[%s2444_s19] sm:$0xff] %vm312_vm2, %v1508_v0  ;;  %v1445_v6 = vadd.f32 %v2432_v41, %v1374_v2  ;;  %v1174_v8 = vadd.f32 %v871_v4, %v381_v58  ;;  %v1206_v9 = vadd.f32 %v1031_v5, %v413_v63 }
 0x106   : > { %1604 = vst.msk [vmem:[%s2444_s19 + $0x100] sm:$0xff] %vm312_vm2, %v1540_v1  ;;  %v1477_v7 = vadd.f32 %v2432_v41, %v1406_v3  ;;  %v1304_v11 = vld [vmem:[#allocation2 + $0x10] sm:$0xff]  ;;  %v873_v13 = vpop.f32.mrf.mxu0  ;;  %v1033_v14 = vpop.f32.mrf.mxu1  ;;  %v417_v1 = vld [vmem:[#allocation2 + $0x140] sm:$0xff] }
 0x107   : > { %v1336_v12 = vld [vmem:[#allocation2 + $0x110] sm:$0xff]  ;;  %v1509_v16 = vmax.f32 %v1445_v6, 0.0  ;;  %v1375_v18 = vmul.f32 %v2427_v38, %v1304_v11  ;;  %1239 = vst.msk [vmem:[#allocation2 + $0x20] sm:$0xff] %vm312_vm2, %v1174_v8  ;;  %1271 = vst.msk [vmem:[#allocation2 + $0x120] sm:$0xff] %vm312_vm2, %v1206_v9 }
 0x108   : > { %v1541_v17 = vmax.f32 %v1477_v7, 0.0  ;;  %v1407_v19 = vmul.f32 %v2427_v38, %v1336_v12  ;;  %v876_v20 = vpop.f32.mrf.mxu0  ;;  %v1036_v21 = vpop.f32.mrf.mxu1  ;;  %v386_v12 = vld [vmem:[#allocation2 + $0x48] sm:$0xff] }
 0x109   : > { %1573 = vst.msk [vmem:[%s2444_s19 + $0x8] sm:$0xff] %vm312_vm2, %v1509_v16  ;;  %v1446_v22 = vadd.f32 %v2432_v41, %v1375_v18  ;;  %v1175_v24 = vadd.f32 %v876_v20, %v382_v10  ;;  %v1207_v25 = vadd.f32 %v1036_v21, %v414_v15 }
 0x10a   : > { %1605 = vst.msk [vmem:[%s2444_s19 + $0x108] sm:$0xff] %vm312_vm2, %v1541_v17  ;;  %v1478_v23 = vadd.f32 %v2432_v41, %v1407_v19  ;;  %v1305_v27 = vld [vmem:[#allocation2 + $0x18] sm:$0xff]  ;;  %v878_v29 = vpop.f32.mrf.mxu0  ;;  %v1038_v30 = vpop.f32.mrf.mxu1  ;;  %v418_v17 = vld [vmem:[#allocation2 + $0x148] sm:$0xff] }
 0x10b   : > { %v1337_v28 = vld [vmem:[#allocation2 + $0x118] sm:$0xff]  ;;  %v1510_v32 = vmax.f32 %v1446_v22, 0.0  ;;  %v1376_v34 = vmul.f32 %v2427_v38, %v1305_v27  ;;  %1240 = vst.msk [vmem:[#allocation2 + $0x28] sm:$0xff] %vm312_vm2, %v1175_v24  ;;  %1272 = vst.msk [vmem:[#allocation2 + $0x128] sm:$0xff] %vm312_vm2, %v1207_v25 }
 0x10c   : > { %v1542_v33 = vmax.f32 %v1478_v23, 0.0  ;;  %v1408_v35 = vmul.f32 %v2427_v38, %v1337_v28  ;;  %v881_v36 = vpop.f32.mrf.mxu0  ;;  %v1041_v37 = vpop.f32.mrf.mxu1  ;;  %v387_v28 = vld [vmem:[#allocation2 + $0x50] sm:$0xff] }
 0x10d   : > { %1574 = vst.msk [vmem:[%s2444_s19 + $0x10] sm:$0xff] %vm312_vm2, %v1510_v32  ;;  %v1447_v39 = vadd.f32 %v2432_v41, %v1376_v34  ;;  %v1176_v42 = vadd.f32 %v881_v36, %v383_v26  ;;  %v1208_v43 = vadd.f32 %v1041_v37, %v415_v31 }
 0x10e   : > { %1606 = vst.msk [vmem:[%s2444_s19 + $0x110] sm:$0xff] %vm312_vm2, %v1542_v33  ;;  %v1479_v40 = vadd.f32 %v2432_v41, %v1408_v35  ;;  %v1306_v45 = vld [vmem:[#allocation2 + $0x20] sm:$0xff]  ;;  %v883_v47 = vpop.f32.mrf.mxu0  ;;  %v1043_v48 = vpop.f32.mrf.mxu1  ;;  %v419_v33 = vld [vmem:[#allocation2 + $0x150] sm:$0xff] }
 0x10f   : > { %v1338_v46 = vld [vmem:[#allocation2 + $0x120] sm:$0xff]  ;;  %v1511_v50 = vmax.f32 %v1447_v39, 0.0  ;;  %v1377_v52 = vmul.f32 %v2427_v38, %v1306_v45  ;;  %1241 = vst.msk [vmem:[#allocation2 + $0x30] sm:$0xff] %vm312_vm2, %v1176_v42  ;;  %1273 = vst.msk [vmem:[#allocation2 + $0x130] sm:$0xff] %vm312_vm2, %v1208_v43 }
 0x110   : > { %v1543_v51 = vmax.f32 %v1479_v40, 0.0  ;;  %v1409_v53 = vmul.f32 %v2427_v38, %v1338_v46  ;;  %v886_v54 = vpop.f32.mrf.mxu0  ;;  %v1046_v55 = vpop.f32.mrf.mxu1  ;;  %v388_v46 = vld [vmem:[#allocation2 + $0x58] sm:$0xff] }
 0x111   : > { %1575 = vst.msk [vmem:[%s2444_s19 + $0x18] sm:$0xff] %vm312_vm2, %v1511_v50  ;;  %v1448_v56 = vadd.f32 %v2432_v41, %v1377_v52  ;;  %v1177_v58 = vadd.f32 %v886_v54, %v384_v44  ;;  %v1209_v59 = vadd.f32 %v1046_v55, %v416_v49 }
 0x112   : > { %1607 = vst.msk [vmem:[%s2444_s19 + $0x118] sm:$0xff] %vm312_vm2, %v1543_v51  ;;  %v1480_v57 = vadd.f32 %v2432_v41, %v1409_v53  ;;  %v1307_v61 = vld [vmem:[#allocation2 + $0x28] sm:$0xff]  ;;  %v888_v63 = vpop.f32.mrf.mxu0  ;;  %v1048_v0 = vpop.f32.mrf.mxu1  ;;  %v420_v51 = vld [vmem:[#allocation2 + $0x158] sm:$0xff] }
 0x113   : > { %v1339_v62 = vld [vmem:[#allocation2 + $0x128] sm:$0xff]  ;;  %v1512_v2 = vmax.f32 %v1448_v56, 0.0  ;;  %v1378_v4 = vmul.f32 %v2427_v38, %v1307_v61  ;;  %1242 = vst.msk [vmem:[#allocation2 + $0x38] sm:$0xff] %vm312_vm2, %v1177_v58  ;;  %1274 = vst.msk [vmem:[#allocation2 + $0x138] sm:$0xff] %vm312_vm2, %v1209_v59 }
 0x114   : > { %v1544_v3 = vmax.f32 %v1480_v57, 0.0  ;;  %v1410_v5 = vmul.f32 %v2427_v38, %v1339_v62  ;;  %v891_v6 = vpop.f32.mrf.mxu0  ;;  %v1051_v7 = vpop.f32.mrf.mxu1  ;;  %v389_v62 = vld [vmem:[#allocation2 + $0x60] sm:$0xff] }
 0x115   : > { %1576 = vst.msk [vmem:[%s2444_s19 + $0x20] sm:$0xff] %vm312_vm2, %v1512_v2  ;;  %v1449_v8 = vadd.f32 %v2432_v41, %v1378_v4  ;;  %v1178_v10 = vadd.f32 %v891_v6, %v385_v60  ;;  %v1210_v11 = vadd.f32 %v1051_v7, %v417_v1 }
 0x116   : > { %1608 = vst.msk [vmem:[%s2444_s19 + $0x120] sm:$0xff] %vm312_vm2, %v1544_v3  ;;  %v1481_v9 = vadd.f32 %v2432_v41, %v1410_v5  ;;  %v1308_v13 = vld [vmem:[#allocation2 + $0x30] sm:$0xff]  ;;  %v893_v15 = vpop.f32.mrf.mxu0  ;;  %v1053_v16 = vpop.f32.mrf.mxu1  ;;  %v421_v3 = vld [vmem:[#allocation2 + $0x160] sm:$0xff] }
 0x117   : > { %v1340_v14 = vld [vmem:[#allocation2 + $0x130] sm:$0xff]  ;;  %v1513_v18 = vmax.f32 %v1449_v8, 0.0  ;;  %v1379_v20 = vmul.f32 %v2427_v38, %v1308_v13  ;;  %1243 = vst.msk [vmem:[#allocation2 + $0x40] sm:$0xff] %vm312_vm2, %v1178_v10  ;;  %1275 = vst.msk [vmem:[#allocation2 + $0x140] sm:$0xff] %vm312_vm2, %v1210_v11 }
 0x118   : > { %v1545_v19 = vmax.f32 %v1481_v9, 0.0  ;;  %v1411_v21 = vmul.f32 %v2427_v38, %v1340_v14  ;;  %v896_v22 = vpop.f32.mrf.mxu0  ;;  %v1056_v23 = vpop.f32.mrf.mxu1  ;;  %v390_v14 = vld [vmem:[#allocation2 + $0x68] sm:$0xff] }
 0x119   : > { %1577 = vst.msk [vmem:[%s2444_s19 + $0x28] sm:$0xff] %vm312_vm2, %v1513_v18  ;;  %v1450_v24 = vadd.f32 %v2432_v41, %v1379_v20  ;;  %v1179_v26 = vadd.f32 %v896_v22, %v386_v12  ;;  %v1211_v27 = vadd.f32 %v1056_v23, %v418_v17 }
 0x11a   : > { %1609 = vst.msk [vmem:[%s2444_s19 + $0x128] sm:$0xff] %vm312_vm2, %v1545_v19  ;;  %v1482_v25 = vadd.f32 %v2432_v41, %v1411_v21  ;;  %v1309_v29 = vld [vmem:[#allocation2 + $0x38] sm:$0xff]  ;;  %v898_v31 = vpop.f32.mrf.mxu0  ;;  %v1058_v32 = vpop.f32.mrf.mxu1  ;;  %v422_v19 = vld [vmem:[#allocation2 + $0x168] sm:$0xff] }
 0x11b   : > { %v1341_v30 = vld [vmem:[#allocation2 + $0x138] sm:$0xff]  ;;  %v1514_v34 = vmax.f32 %v1450_v24, 0.0  ;;  %v1380_v36 = vmul.f32 %v2427_v38, %v1309_v29  ;;  %1244 = vst.msk [vmem:[#allocation2 + $0x48] sm:$0xff] %vm312_vm2, %v1179_v26  ;;  %1276 = vst.msk [vmem:[#allocation2 + $0x148] sm:$0xff] %vm312_vm2, %v1211_v27 }
 0x11c   : > { %v1546_v35 = vmax.f32 %v1482_v25, 0.0  ;;  %v1412_v37 = vmul.f32 %v2427_v38, %v1341_v30  ;;  %v901_v39 = vpop.f32.mrf.mxu0  ;;  %v1061_v40 = vpop.f32.mrf.mxu1  ;;  %v391_v30 = vld [vmem:[#allocation2 + $0x70] sm:$0xff] }
 0x11d   : > { %1578 = vst.msk [vmem:[%s2444_s19 + $0x30] sm:$0xff] %vm312_vm2, %v1514_v34  ;;  %v1451_v42 = vadd.f32 %v2432_v41, %v1380_v36  ;;  %v1180_v44 = vadd.f32 %v901_v39, %v387_v28  ;;  %v1212_v45 = vadd.f32 %v1061_v40, %v419_v33 }
 0x11e   : > { %1610 = vst.msk [vmem:[%s2444_s19 + $0x130] sm:$0xff] %vm312_vm2, %v1546_v35  ;;  %v1483_v43 = vadd.f32 %v2432_v41, %v1412_v37  ;;  %v1310_v47 = vld [vmem:[#allocation2 + $0x40] sm:$0xff]  ;;  %v903_v49 = vpop.f32.mrf.mxu0  ;;  %v1063_v50 = vpop.f32.mrf.mxu1  ;;  %v423_v35 = vld [vmem:[#allocation2 + $0x170] sm:$0xff] }
 0x11f   : > { %v1342_v48 = vld [vmem:[#allocation2 + $0x140] sm:$0xff]  ;;  %v1515_v52 = vmax.f32 %v1451_v42, 0.0  ;;  %v1381_v54 = vmul.f32 %v2427_v38, %v1310_v47  ;;  %1245 = vst.msk [vmem:[#allocation2 + $0x50] sm:$0xff] %vm312_vm2, %v1180_v44  ;;  %1277 = vst.msk [vmem:[#allocation2 + $0x150] sm:$0xff] %vm312_vm2, %v1212_v45 }
 0x120   : > { %v1547_v53 = vmax.f32 %v1483_v43, 0.0  ;;  %v1413_v55 = vmul.f32 %v2427_v38, %v1342_v48  ;;  %v906_v56 = vpop.f32.mrf.mxu0  ;;  %v1066_v57 = vpop.f32.mrf.mxu1  ;;  %v392_v48 = vld [vmem:[#allocation2 + $0x78] sm:$0xff] }
 0x121   : > { %1579 = vst.msk [vmem:[%s2444_s19 + $0x38] sm:$0xff] %vm312_vm2, %v1515_v52  ;;  %v1452_v58 = vadd.f32 %v2432_v41, %v1381_v54  ;;  %v1181_v60 = vadd.f32 %v906_v56, %v388_v46  ;;  %v1213_v61 = vadd.f32 %v1066_v57, %v420_v51 }
 0x122   : > { %1611 = vst.msk [vmem:[%s2444_s19 + $0x138] sm:$0xff] %vm312_vm2, %v1547_v53  ;;  %v1484_v59 = vadd.f32 %v2432_v41, %v1413_v55  ;;  %v1311_v63 = vld [vmem:[#allocation2 + $0x48] sm:$0xff]  ;;  %v908_v1 = vpop.f32.mrf.mxu0  ;;  %v1068_v2 = vpop.f32.mrf.mxu1  ;;  %v424_v53 = vld [vmem:[#allocation2 + $0x178] sm:$0xff] }
 0x123   : > { %v1343_v0 = vld [vmem:[#allocation2 + $0x148] sm:$0xff]  ;;  %v1516_v4 = vmax.f32 %v1452_v58, 0.0  ;;  %v1382_v6 = vmul.f32 %v2427_v38, %v1311_v63  ;;  %1246 = vst.msk [vmem:[#allocation2 + $0x58] sm:$0xff] %vm312_vm2, %v1181_v60  ;;  %1278 = vst.msk [vmem:[#allocation2 + $0x158] sm:$0xff] %vm312_vm2, %v1213_v61 }
 0x124   : > { %v1548_v5 = vmax.f32 %v1484_v59, 0.0  ;;  %v1414_v7 = vmul.f32 %v2427_v38, %v1343_v0  ;;  %v911_v8 = vpop.f32.mrf.mxu0  ;;  %v1071_v9 = vpop.f32.mrf.mxu1  ;;  %v393_v0 = vld [vmem:[#allocation2 + $0x80] sm:$0xff] }
 0x125   : > { %1580 = vst.msk [vmem:[%s2444_s19 + $0x40] sm:$0xff] %vm312_vm2, %v1516_v4  ;;  %v1453_v10 = vadd.f32 %v2432_v41, %v1382_v6  ;;  %v1182_v12 = vadd.f32 %v911_v8, %v389_v62  ;;  %v1214_v13 = vadd.f32 %v1071_v9, %v421_v3 }
 0x126   : > { %1612 = vst.msk [vmem:[%s2444_s19 + $0x140] sm:$0xff] %vm312_vm2, %v1548_v5  ;;  %v1485_v11 = vadd.f32 %v2432_v41, %v1414_v7  ;;  %v1312_v15 = vld [vmem:[#allocation2 + $0x50] sm:$0xff]  ;;  %v913_v17 = vpop.f32.mrf.mxu0  ;;  %v1073_v18 = vpop.f32.mrf.mxu1  ;;  %v425_v5 = vld [vmem:[#allocation2 + $0x180] sm:$0xff] }
 0x127   : > { %v1344_v16 = vld [vmem:[#allocation2 + $0x150] sm:$0xff]  ;;  %v1517_v20 = vmax.f32 %v1453_v10, 0.0  ;;  %v1383_v22 = vmul.f32 %v2427_v38, %v1312_v15  ;;  %1247 = vst.msk [vmem:[#allocation2 + $0x60] sm:$0xff] %vm312_vm2, %v1182_v12  ;;  %1279 = vst.msk [vmem:[#allocation2 + $0x160] sm:$0xff] %vm312_vm2, %v1214_v13 }
 0x128   : > { %v1549_v21 = vmax.f32 %v1485_v11, 0.0  ;;  %v1415_v23 = vmul.f32 %v2427_v38, %v1344_v16  ;;  %v916_v24 = vpop.f32.mrf.mxu0  ;;  %v1076_v25 = vpop.f32.mrf.mxu1  ;;  %v394_v16 = vld [vmem:[#allocation2 + $0x88] sm:$0xff] }
 0x129   : > { %1581 = vst.msk [vmem:[%s2444_s19 + $0x48] sm:$0xff] %vm312_vm2, %v1517_v20  ;;  %v1454_v26 = vadd.f32 %v2432_v41, %v1383_v22  ;;  %v1183_v28 = vadd.f32 %v916_v24, %v390_v14  ;;  %v1215_v29 = vadd.f32 %v1076_v25, %v422_v19 }
 0x12a   : > { %1613 = vst.msk [vmem:[%s2444_s19 + $0x148] sm:$0xff] %vm312_vm2, %v1549_v21  ;;  %v1486_v27 = vadd.f32 %v2432_v41, %v1415_v23  ;;  %v1313_v31 = vld [vmem:[#allocation2 + $0x58] sm:$0xff]  ;;  %v918_v33 = vpop.f32.mrf.mxu0  ;;  %v1078_v34 = vpop.f32.mrf.mxu1  ;;  %v426_v21 = vld [vmem:[#allocation2 + $0x188] sm:$0xff] }
 0x12b   : > { %v1345_v32 = vld [vmem:[#allocation2 + $0x158] sm:$0xff]  ;;  %v1518_v36 = vmax.f32 %v1454_v26, 0.0  ;;  %v1384_v39 = vmul.f32 %v2427_v38, %v1313_v31  ;;  %1248 = vst.msk [vmem:[#allocation2 + $0x68] sm:$0xff] %vm312_vm2, %v1183_v28  ;;  %1280 = vst.msk [vmem:[#allocation2 + $0x168] sm:$0xff] %vm312_vm2, %v1215_v29 }
 0x12c   : > { %v1550_v37 = vmax.f32 %v1486_v27, 0.0  ;;  %v1416_v40 = vmul.f32 %v2427_v38, %v1345_v32  ;;  %v921_v42 = vpop.f32.mrf.mxu0  ;;  %v1081_v43 = vpop.f32.mrf.mxu1  ;;  %v395_v32 = vld [vmem:[#allocation2 + $0x90] sm:$0xff] }
 0x12d   : > { %1582 = vst.msk [vmem:[%s2444_s19 + $0x50] sm:$0xff] %vm312_vm2, %v1518_v36  ;;  %v1455_v44 = vadd.f32 %v2432_v41, %v1384_v39  ;;  %v1184_v46 = vadd.f32 %v921_v42, %v391_v30  ;;  %v1216_v47 = vadd.f32 %v1081_v43, %v423_v35 }
 0x12e   : > { %1614 = vst.msk [vmem:[%s2444_s19 + $0x150] sm:$0xff] %vm312_vm2, %v1550_v37  ;;  %v1487_v45 = vadd.f32 %v2432_v41, %v1416_v40  ;;  %v1314_v49 = vld [vmem:[#allocation2 + $0x60] sm:$0xff]  ;;  %v923_v51 = vpop.f32.mrf.mxu0  ;;  %v1083_v52 = vpop.f32.mrf.mxu1  ;;  %v427_v37 = vld [vmem:[#allocation2 + $0x190] sm:$0xff] }
 0x12f   : > { %v1346_v50 = vld [vmem:[#allocation2 + $0x160] sm:$0xff]  ;;  %v1519_v54 = vmax.f32 %v1455_v44, 0.0  ;;  %v1385_v56 = vmul.f32 %v2427_v38, %v1314_v49  ;;  %1249 = vst.msk [vmem:[#allocation2 + $0x70] sm:$0xff] %vm312_vm2, %v1184_v46  ;;  %1281 = vst.msk [vmem:[#allocation2 + $0x170] sm:$0xff] %vm312_vm2, %v1216_v47 }
 0x130   : > { %v1551_v55 = vmax.f32 %v1487_v45, 0.0  ;;  %v1417_v57 = vmul.f32 %v2427_v38, %v1346_v50  ;;  %v926_v58 = vpop.f32.mrf.mxu0  ;;  %v1086_v59 = vpop.f32.mrf.mxu1  ;;  %v396_v50 = vld [vmem:[#allocation2 + $0x98] sm:$0xff] }
 0x131   : > { %1583 = vst.msk [vmem:[%s2444_s19 + $0x58] sm:$0xff] %vm312_vm2, %v1519_v54  ;;  %v1456_v60 = vadd.f32 %v2432_v41, %v1385_v56  ;;  %v1185_v62 = vadd.f32 %v926_v58, %v392_v48  ;;  %v1217_v63 = vadd.f32 %v1086_v59, %v424_v53 }
 0x132   : > { %1615 = vst.msk [vmem:[%s2444_s19 + $0x158] sm:$0xff] %vm312_vm2, %v1551_v55  ;;  %v1488_v61 = vadd.f32 %v2432_v41, %v1417_v57  ;;  %v1315_v1 = vld [vmem:[#allocation2 + $0x68] sm:$0xff]  ;;  %v928_v3 = vpop.f32.mrf.mxu0  ;;  %v1088_v4 = vpop.f32.mrf.mxu1  ;;  %v428_v55 = vld [vmem:[#allocation2 + $0x198] sm:$0xff] }
 0x133   : > { %v1347_v2 = vld [vmem:[#allocation2 + $0x168] sm:$0xff]  ;;  %v1520_v6 = vmax.f32 %v1456_v60, 0.0  ;;  %v1386_v8 = vmul.f32 %v2427_v38, %v1315_v1  ;;  %1250 = vst.msk [vmem:[#allocation2 + $0x78] sm:$0xff] %vm312_vm2, %v1185_v62  ;;  %1282 = vst.msk [vmem:[#allocation2 + $0x178] sm:$0xff] %vm312_vm2, %v1217_v63 }
 0x134   : > { %v1552_v7 = vmax.f32 %v1488_v61, 0.0  ;;  %v1418_v9 = vmul.f32 %v2427_v38, %v1347_v2  ;;  %v931_v10 = vpop.f32.mrf.mxu0  ;;  %v1091_v11 = vpop.f32.mrf.mxu1  ;;  %v397_v2 = vld [vmem:[#allocation2 + $0xa0] sm:$0xff] }
 0x135   : > { %1584 = vst.msk [vmem:[%s2444_s19 + $0x60] sm:$0xff] %vm312_vm2, %v1520_v6  ;;  %v1457_v12 = vadd.f32 %v2432_v41, %v1386_v8  ;;  %v1186_v14 = vadd.f32 %v931_v10, %v393_v0  ;;  %v1218_v15 = vadd.f32 %v1091_v11, %v425_v5 }
 0x136   : > { %1616 = vst.msk [vmem:[%s2444_s19 + $0x160] sm:$0xff] %vm312_vm2, %v1552_v7  ;;  %v1489_v13 = vadd.f32 %v2432_v41, %v1418_v9  ;;  %v1316_v17 = vld [vmem:[#allocation2 + $0x70] sm:$0xff]  ;;  %v933_v19 = vpop.f32.mrf.mxu0  ;;  %v1093_v20 = vpop.f32.mrf.mxu1  ;;  %v429_v7 = vld [vmem:[#allocation2 + $0x1a0] sm:$0xff] }
 0x137   : > { %v1348_v18 = vld [vmem:[#allocation2 + $0x170] sm:$0xff]  ;;  %v1521_v22 = vmax.f32 %v1457_v12, 0.0  ;;  %v1387_v24 = vmul.f32 %v2427_v38, %v1316_v17  ;;  %1251 = vst.msk [vmem:[#allocation2 + $0x80] sm:$0xff] %vm312_vm2, %v1186_v14  ;;  %1283 = vst.msk [vmem:[#allocation2 + $0x180] sm:$0xff] %vm312_vm2, %v1218_v15 }
 0x138   : > { %v1553_v23 = vmax.f32 %v1489_v13, 0.0  ;;  %v1419_v25 = vmul.f32 %v2427_v38, %v1348_v18  ;;  %v936_v26 = vpop.f32.mrf.mxu0  ;;  %v1096_v27 = vpop.f32.mrf.mxu1  ;;  %v398_v18 = vld [vmem:[#allocation2 + $0xa8] sm:$0xff] }
 0x139   : > { %1585 = vst.msk [vmem:[%s2444_s19 + $0x68] sm:$0xff] %vm312_vm2, %v1521_v22  ;;  %v1458_v28 = vadd.f32 %v2432_v41, %v1387_v24  ;;  %v1187_v30 = vadd.f32 %v936_v26, %v394_v16  ;;  %v1219_v31 = vadd.f32 %v1096_v27, %v426_v21 }
 0x13a   : > { %1617 = vst.msk [vmem:[%s2444_s19 + $0x168] sm:$0xff] %vm312_vm2, %v1553_v23  ;;  %v1490_v29 = vadd.f32 %v2432_v41, %v1419_v25  ;;  %v1317_v33 = vld [vmem:[#allocation2 + $0x78] sm:$0xff]  ;;  %v938_v35 = vpop.f32.mrf.mxu0  ;;  %v1098_v36 = vpop.f32.mrf.mxu1  ;;  %v430_v23 = vld [vmem:[#allocation2 + $0x1a8] sm:$0xff] }
 0x13b   : > { %v1349_v34 = vld [vmem:[#allocation2 + $0x178] sm:$0xff]  ;;  %v1522_v39 = vmax.f32 %v1458_v28, 0.0  ;;  %v1388_v42 = vmul.f32 %v2427_v38, %v1317_v33  ;;  %1252 = vst.msk [vmem:[#allocation2 + $0x88] sm:$0xff] %vm312_vm2, %v1187_v30  ;;  %1284 = vst.msk [vmem:[#allocation2 + $0x188] sm:$0xff] %vm312_vm2, %v1219_v31 }
 0x13c   : > { %v1554_v40 = vmax.f32 %v1490_v29, 0.0  ;;  %v1420_v43 = vmul.f32 %v2427_v38, %v1349_v34  ;;  %v941_v44 = vpop.f32.mrf.mxu0  ;;  %v1101_v45 = vpop.f32.mrf.mxu1  ;;  %v399_v34 = vld [vmem:[#allocation2 + $0xb0] sm:$0xff] }
 0x13d   : > { %1586 = vst.msk [vmem:[%s2444_s19 + $0x70] sm:$0xff] %vm312_vm2, %v1522_v39  ;;  %v1459_v46 = vadd.f32 %v2432_v41, %v1388_v42  ;;  %v1188_v48 = vadd.f32 %v941_v44, %v395_v32  ;;  %v1220_v49 = vadd.f32 %v1101_v45, %v427_v37 }
 0x13e   : > { %1618 = vst.msk [vmem:[%s2444_s19 + $0x170] sm:$0xff] %vm312_vm2, %v1554_v40  ;;  %v1491_v47 = vadd.f32 %v2432_v41, %v1420_v43  ;;  %v1318_v51 = vld [vmem:[#allocation2 + $0x80] sm:$0xff]  ;;  %v943_v53 = vpop.f32.mrf.mxu0  ;;  %v1103_v54 = vpop.f32.mrf.mxu1  ;;  %v431_v40 = vld [vmem:[#allocation2 + $0x1b0] sm:$0xff] }
 0x13f   : > { %v1350_v52 = vld [vmem:[#allocation2 + $0x180] sm:$0xff]  ;;  %v1523_v56 = vmax.f32 %v1459_v46, 0.0  ;;  %v1389_v58 = vmul.f32 %v2427_v38, %v1318_v51  ;;  %1253 = vst.msk [vmem:[#allocation2 + $0x90] sm:$0xff] %vm312_vm2, %v1188_v48  ;;  %1285 = vst.msk [vmem:[#allocation2 + $0x190] sm:$0xff] %vm312_vm2, %v1220_v49 }
 0x140   : > { %v1555_v57 = vmax.f32 %v1491_v47, 0.0  ;;  %v1421_v59 = vmul.f32 %v2427_v38, %v1350_v52  ;;  %v946_v60 = vpop.f32.mrf.mxu0  ;;  %v1106_v61 = vpop.f32.mrf.mxu1  ;;  %v400_v52 = vld [vmem:[#allocation2 + $0xb8] sm:$0xff] }
 0x141   : > { %1587 = vst.msk [vmem:[%s2444_s19 + $0x78] sm:$0xff] %vm312_vm2, %v1523_v56  ;;  %v1460_v62 = vadd.f32 %v2432_v41, %v1389_v58  ;;  %v1189_v0 = vadd.f32 %v946_v60, %v396_v50  ;;  %v1221_v1 = vadd.f32 %v1106_v61, %v428_v55 }
 0x142   : > { %1619 = vst.msk [vmem:[%s2444_s19 + $0x178] sm:$0xff] %vm312_vm2, %v1555_v57  ;;  %v1492_v63 = vadd.f32 %v2432_v41, %v1421_v59  ;;  %v1319_v3 = vld [vmem:[#allocation2 + $0x88] sm:$0xff]  ;;  %v948_v5 = vpop.f32.mrf.mxu0  ;;  %v1108_v6 = vpop.f32.mrf.mxu1  ;;  %v432_v57 = vld [vmem:[#allocation2 + $0x1b8] sm:$0xff] }
 0x143   : > { %v1351_v4 = vld [vmem:[#allocation2 + $0x188] sm:$0xff]  ;;  %v1524_v8 = vmax.f32 %v1460_v62, 0.0  ;;  %v1390_v10 = vmul.f32 %v2427_v38, %v1319_v3  ;;  %1254 = vst.msk [vmem:[#allocation2 + $0x98] sm:$0xff] %vm312_vm2, %v1189_v0  ;;  %1286 = vst.msk [vmem:[#allocation2 + $0x198] sm:$0xff] %vm312_vm2, %v1221_v1 }
 0x144   : > { %v1556_v9 = vmax.f32 %v1492_v63, 0.0  ;;  %v1422_v11 = vmul.f32 %v2427_v38, %v1351_v4  ;;  %v951_v12 = vpop.f32.mrf.mxu0  ;;  %v1111_v13 = vpop.f32.mrf.mxu1  ;;  %v401_v4 = vld [vmem:[#allocation2 + $0xc0] sm:$0xff] }
 0x145   : > { %1588 = vst.msk [vmem:[%s2444_s19 + $0x80] sm:$0xff] %vm312_vm2, %v1524_v8  ;;  %v1461_v14 = vadd.f32 %v2432_v41, %v1390_v10  ;;  %v1190_v16 = vadd.f32 %v951_v12, %v397_v2  ;;  %v1222_v17 = vadd.f32 %v1111_v13, %v429_v7 }
 0x146   : > { %1620 = vst.msk [vmem:[%s2444_s19 + $0x180] sm:$0xff] %vm312_vm2, %v1556_v9  ;;  %v1493_v15 = vadd.f32 %v2432_v41, %v1422_v11  ;;  %v1320_v19 = vld [vmem:[#allocation2 + $0x90] sm:$0xff]  ;;  %v953_v21 = vpop.f32.mrf.mxu0  ;;  %v1113_v22 = vpop.f32.mrf.mxu1  ;;  %v433_v9 = vld [vmem:[#allocation2 + $0x1c0] sm:$0xff] }
 0x147   : > { %v1352_v20 = vld [vmem:[#allocation2 + $0x190] sm:$0xff]  ;;  %v1525_v24 = vmax.f32 %v1461_v14, 0.0  ;;  %v1391_v26 = vmul.f32 %v2427_v38, %v1320_v19  ;;  %1255 = vst.msk [vmem:[#allocation2 + $0xa0] sm:$0xff] %vm312_vm2, %v1190_v16  ;;  %1287 = vst.msk [vmem:[#allocation2 + $0x1a0] sm:$0xff] %vm312_vm2, %v1222_v17 }
 0x148   : > { %v1557_v25 = vmax.f32 %v1493_v15, 0.0  ;;  %v1423_v27 = vmul.f32 %v2427_v38, %v1352_v20  ;;  %v956_v28 = vpop.f32.mrf.mxu0  ;;  %v1116_v29 = vpop.f32.mrf.mxu1  ;;  %v402_v20 = vld [vmem:[#allocation2 + $0xc8] sm:$0xff] }
 0x149   : > { %1589 = vst.msk [vmem:[%s2444_s19 + $0x88] sm:$0xff] %vm312_vm2, %v1525_v24  ;;  %v1462_v30 = vadd.f32 %v2432_v41, %v1391_v26  ;;  %v1191_v32 = vadd.f32 %v956_v28, %v398_v18  ;;  %v1223_v33 = vadd.f32 %v1116_v29, %v430_v23 }
 0x14a   : > { %1621 = vst.msk [vmem:[%s2444_s19 + $0x188] sm:$0xff] %vm312_vm2, %v1557_v25  ;;  %v1494_v31 = vadd.f32 %v2432_v41, %v1423_v27  ;;  %v1321_v35 = vld [vmem:[#allocation2 + $0x98] sm:$0xff]  ;;  %v958_v37 = vpop.f32.mrf.mxu0  ;;  %v1118_v39 = vpop.f32.mrf.mxu1  ;;  %v434_v25 = vld [vmem:[#allocation2 + $0x1c8] sm:$0xff] }
 0x14b   : > { %v1353_v36 = vld [vmem:[#allocation2 + $0x198] sm:$0xff]  ;;  %v1526_v42 = vmax.f32 %v1462_v30, 0.0  ;;  %v1392_v44 = vmul.f32 %v2427_v38, %v1321_v35  ;;  %1256 = vst.msk [vmem:[#allocation2 + $0xa8] sm:$0xff] %vm312_vm2, %v1191_v32  ;;  %1288 = vst.msk [vmem:[#allocation2 + $0x1a8] sm:$0xff] %vm312_vm2, %v1223_v33 }
 0x14c   : > { %v1558_v43 = vmax.f32 %v1494_v31, 0.0  ;;  %v1424_v45 = vmul.f32 %v2427_v38, %v1353_v36  ;;  %v961_v46 = vpop.f32.mrf.mxu0  ;;  %v1121_v47 = vpop.f32.mrf.mxu1  ;;  %v403_v36 = vld [vmem:[#allocation2 + $0xd0] sm:$0xff] }
 0x14d   : > { %1590 = vst.msk [vmem:[%s2444_s19 + $0x90] sm:$0xff] %vm312_vm2, %v1526_v42  ;;  %v1463_v48 = vadd.f32 %v2432_v41, %v1392_v44  ;;  %v1192_v50 = vadd.f32 %v961_v46, %v399_v34  ;;  %v1224_v51 = vadd.f32 %v1121_v47, %v431_v40 }
 0x14e   : > { %1622 = vst.msk [vmem:[%s2444_s19 + $0x190] sm:$0xff] %vm312_vm2, %v1558_v43  ;;  %v1495_v49 = vadd.f32 %v2432_v41, %v1424_v45  ;;  %v1322_v53 = vld [vmem:[#allocation2 + $0xa0] sm:$0xff]  ;;  %v963_v55 = vpop.f32.mrf.mxu0  ;;  %v1123_v56 = vpop.f32.mrf.mxu1  ;;  %v435_v43 = vld [vmem:[#allocation2 + $0x1d0] sm:$0xff] }
 0x14f   : > { %v1354_v54 = vld [vmem:[#allocation2 + $0x1a0] sm:$0xff]  ;;  %v1527_v58 = vmax.f32 %v1463_v48, 0.0  ;;  %v1393_v60 = vmul.f32 %v2427_v38, %v1322_v53  ;;  %1257 = vst.msk [vmem:[#allocation2 + $0xb0] sm:$0xff] %vm312_vm2, %v1192_v50  ;;  %1289 = vst.msk [vmem:[#allocation2 + $0x1b0] sm:$0xff] %vm312_vm2, %v1224_v51 }
 0x150   : > { %v1559_v59 = vmax.f32 %v1495_v49, 0.0  ;;  %v1425_v61 = vmul.f32 %v2427_v38, %v1354_v54  ;;  %v966_v62 = vpop.f32.mrf.mxu0  ;;  %v1126_v63 = vpop.f32.mrf.mxu1  ;;  %v404_v54 = vld [vmem:[#allocation2 + $0xd8] sm:$0xff] }
 0x151   : > { %1591 = vst.msk [vmem:[%s2444_s19 + $0x98] sm:$0xff] %vm312_vm2, %v1527_v58  ;;  %v1464_v0 = vadd.f32 %v2432_v41, %v1393_v60  ;;  %v1193_v2 = vadd.f32 %v966_v62, %v400_v52  ;;  %v1225_v3 = vadd.f32 %v1126_v63, %v432_v57 }
 0x152   : > { %1623 = vst.msk [vmem:[%s2444_s19 + $0x198] sm:$0xff] %vm312_vm2, %v1559_v59  ;;  %v1496_v1 = vadd.f32 %v2432_v41, %v1425_v61  ;;  %v1323_v5 = vld [vmem:[#allocation2 + $0xa8] sm:$0xff]  ;;  %v968_v7 = vpop.f32.mrf.mxu0  ;;  %v1128_v8 = vpop.f32.mrf.mxu1  ;;  %v436_v59 = vld [vmem:[#allocation2 + $0x1d8] sm:$0xff] }
 0x153   : > { %v1355_v6 = vld [vmem:[#allocation2 + $0x1a8] sm:$0xff]  ;;  %v1528_v10 = vmax.f32 %v1464_v0, 0.0  ;;  %v1394_v12 = vmul.f32 %v2427_v38, %v1323_v5  ;;  %1258 = vst.msk [vmem:[#allocation2 + $0xb8] sm:$0xff] %vm312_vm2, %v1193_v2  ;;  %1290 = vst.msk [vmem:[#allocation2 + $0x1b8] sm:$0xff] %vm312_vm2, %v1225_v3 }
 0x154   : > { %v1560_v11 = vmax.f32 %v1496_v1, 0.0  ;;  %v1426_v13 = vmul.f32 %v2427_v38, %v1355_v6  ;;  %v971_v14 = vpop.f32.mrf.mxu0  ;;  %v1131_v15 = vpop.f32.mrf.mxu1  ;;  %v405_v6 = vld [vmem:[#allocation2 + $0xe0] sm:$0xff] }
 0x155   : > { %1592 = vst.msk [vmem:[%s2444_s19 + $0xa0] sm:$0xff] %vm312_vm2, %v1528_v10  ;;  %v1465_v16 = vadd.f32 %v2432_v41, %v1394_v12  ;;  %v1194_v18 = vadd.f32 %v971_v14, %v401_v4  ;;  %v1226_v19 = vadd.f32 %v1131_v15, %v433_v9  ;;  %v437_v10 = vld [vmem:[#allocation2 + $0x1e0] sm:$0xff] }
 0x156   : > { %1624 = vst.msk [vmem:[%s2444_s19 + $0x1a0] sm:$0xff] %vm312_vm2, %v1560_v11  ;;  %v1497_v17 = vadd.f32 %v2432_v41, %v1426_v13  ;;  %v1324_v21 = vld [vmem:[#allocation2 + $0xb0] sm:$0xff]  ;;  %v973_v23 = vpop.f32.mrf.mxu0  ;;  %v1133_v24 = vpop.f32.mrf.mxu1  ;;  %v2689_v13 = vld [vmem:[%s2777_s2] ss:$0 sm:$0xff] }
 0x157   : > { %v1356_v22 = vld [vmem:[#allocation2 + $0x1b0] sm:$0xff]  ;;  %v1529_v26 = vmax.f32 %v1465_v16, 0.0  ;;  %v1395_v28 = vmul.f32 %v2427_v38, %v1324_v21  ;;  %1259 = vst.msk [vmem:[#allocation2 + $0xc0] sm:$0xff] %vm312_vm2, %v1194_v18  ;;  %1291 = vst.msk [vmem:[#allocation2 + $0x1c0] sm:$0xff] %vm312_vm2, %v1226_v19 }
 0x158   : > { %v1561_v27 = vmax.f32 %v1497_v17, 0.0  ;;  %v1427_v29 = vmul.f32 %v2427_v38, %v1356_v22  ;;  %v976_v30 = vpop.f32.mrf.mxu0  ;;  %v1136_v31 = vpop.f32.mrf.mxu1  ;;  %v2702_v17 = vld [vmem:[%s2778_s3] ss:$0 sm:$0xff]  ;;  %v406_v22 = vld [vmem:[#allocation2 + $0xe8] sm:$0xff] }
 0x159   : > { %1593 = vst.msk [vmem:[%s2444_s19 + $0xa8] sm:$0xff] %vm312_vm2, %v1529_v26  ;;  %v1466_v32 = vadd.f32 %v2432_v41, %v1395_v28  ;;  %v1195_v34 = vadd.f32 %v976_v30, %v402_v20  ;;  %v1227_v35 = vadd.f32 %v1136_v31, %v434_v25 }
 0x15a   : > { %1625 = vst.msk [vmem:[%s2444_s19 + $0x1a8] sm:$0xff] %vm312_vm2, %v1561_v27  ;;  %v1498_v33 = vadd.f32 %v2432_v41, %v1427_v29  ;;  %v1325_v37 = vld [vmem:[#allocation2 + $0xb8] sm:$0xff]  ;;  %v978_v40 = vpop.f32.mrf.mxu0  ;;  %v1138_v42 = vpop.f32.mrf.mxu1  ;;  %v438_v27 = vld [vmem:[#allocation2 + $0x1e8] sm:$0xff] }
 0x15b   : > { %v1357_v39 = vld [vmem:[#allocation2 + $0x1b8] sm:$0xff]  ;;  %v1530_v44 = vmax.f32 %v1466_v32, 0.0  ;;  %v1396_v46 = vmul.f32 %v2427_v38, %v1325_v37  ;;  %1260 = vst.msk [vmem:[#allocation2 + $0xc8] sm:$0xff] %vm312_vm2, %v1195_v34  ;;  %1292 = vst.msk [vmem:[#allocation2 + $0x1c8] sm:$0xff] %vm312_vm2, %v1227_v35 }
 0x15c   : > { %v1562_v45 = vmax.f32 %v1498_v33, 0.0  ;;  %v1428_v47 = vmul.f32 %v2427_v38, %v1357_v39  ;;  %v981_v48 = vpop.f32.mrf.mxu0  ;;  %v1141_v49 = vpop.f32.mrf.mxu1  ;;  %v407_v39 = vld [vmem:[#allocation2 + $0xf0] sm:$0xff] }
 0x15d   : > { %1594 = vst.msk [vmem:[%s2444_s19 + $0xb0] sm:$0xff] %vm312_vm2, %v1530_v44  ;;  %v1467_v50 = vadd.f32 %v2432_v41, %v1396_v46  ;;  %v1196_v52 = vadd.f32 %v981_v48, %v403_v36  ;;  %v1228_v53 = vadd.f32 %v1141_v49, %v435_v43 }
 0x15e   : > { %1626 = vst.msk [vmem:[%s2444_s19 + $0x1b0] sm:$0xff] %vm312_vm2, %v1562_v45  ;;  %v1499_v51 = vadd.f32 %v2432_v41, %v1428_v47  ;;  %v1326_v55 = vld [vmem:[#allocation2 + $0xc0] sm:$0xff]  ;;  %v983_v57 = vpop.f32.mrf.mxu0  ;;  %v1143_v58 = vpop.f32.mrf.mxu1  ;;  %v439_v45 = vld [vmem:[#allocation2 + $0x1f0] sm:$0xff] }
 0x15f   : > { %v1358_v56 = vld [vmem:[#allocation2 + $0x1c0] sm:$0xff]  ;;  %v1531_v60 = vmax.f32 %v1467_v50, 0.0  ;;  %v1397_v62 = vmul.f32 %v2427_v38, %v1326_v55  ;;  %1261 = vst.msk [vmem:[#allocation2 + $0xd0] sm:$0xff] %vm312_vm2, %v1196_v52  ;;  %1293 = vst.msk [vmem:[#allocation2 + $0x1d0] sm:$0xff] %vm312_vm2, %v1228_v53 }
 0x160   : > { %v1563_v61 = vmax.f32 %v1499_v51, 0.0  ;;  %v1429_v63 = vmul.f32 %v2427_v38, %v1358_v56  ;;  %v986_v0 = vpop.f32.mrf.mxu0  ;;  %v1146_v1 = vpop.f32.mrf.mxu1  ;;  %v408_v56 = vld [vmem:[#allocation2 + $0xf8] sm:$0xff] }
 0x161   : > { %1595 = vst.msk [vmem:[%s2444_s19 + $0xb8] sm:$0xff] %vm312_vm2, %v1531_v60  ;;  %v1468_v2 = vadd.f32 %v2432_v41, %v1397_v62  ;;  %v1197_v4 = vadd.f32 %v986_v0, %v404_v54  ;;  %v1229_v5 = vadd.f32 %v1146_v1, %v436_v59 }
 0x162   : > { %1627 = vst.msk [vmem:[%s2444_s19 + $0x1b8] sm:$0xff] %vm312_vm2, %v1563_v61  ;;  %v1500_v3 = vadd.f32 %v2432_v41, %v1429_v63  ;;  %v1327_v38 = vld [vmem:[#allocation2 + $0xc8] sm:$0xff]  ;;  %v988_v8 = vpop.f32.mrf.mxu0  ;;  %v1148_v9 = vpop.f32.mrf.mxu1  ;;  %v440_v61 = vld [vmem:[#allocation2 + $0x1f8] sm:$0xff] }
 0x163   : > { %v1359_v7 = vld [vmem:[#allocation2 + $0x1c8] sm:$0xff]  ;;  %v1532_v11 = vmax.f32 %v1468_v2, 0.0  ;;  %v1398_v14 = vmul.f32 %v2689_v13, %v1327_v38  ;;  %1262 = vst.msk [vmem:[#allocation2 + $0xd8] sm:$0xff] %vm312_vm2, %v1197_v4  ;;  %1294 = vst.msk [vmem:[#allocation2 + $0x1d8] sm:$0xff] %vm312_vm2, %v1229_v5 }
 0x164   : > { %v1564_v12 = vmax.f32 %v1500_v3, 0.0  ;;  %v1430_v41 = vmul.f32 %v2689_v13, %v1359_v7  ;;  %v991_v15 = vpop.f32.mrf.mxu0  ;;  %v1151_v16 = vpop.f32.mrf.mxu1 }
 0x165   : > { %1596 = vst.msk [vmem:[%s2444_s19 + $0xc0] sm:$0xff] %vm312_vm2, %v1532_v11  ;;  %v1469_v18 = vadd.f32 %v2702_v17, %v1398_v14  ;;  %v1198_v20 = vadd.f32 %v991_v15, %v405_v6  ;;  %v1230_v21 = vadd.f32 %v1151_v16, %v437_v10 }
 0x166   : > { %1628 = vst.msk [vmem:[%s2444_s19 + $0x1c0] sm:$0xff] %vm312_vm2, %v1564_v12  ;;  %v1501_v19 = vadd.f32 %v2702_v17, %v1430_v41  ;;  %v1328_v23 = vld [vmem:[#allocation2 + $0xd0] sm:$0xff]  ;;  %v993_v25 = vpop.f32.mrf.mxu0  ;;  %v1153_v26 = vpop.f32.mrf.mxu1 }
 0x167   : > { %v1360_v24 = vld [vmem:[#allocation2 + $0x1d0] sm:$0xff]  ;;  %v1533_v28 = vmax.f32 %v1469_v18, 0.0  ;;  %v1399_v30 = vmul.f32 %v2689_v13, %v1328_v23  ;;  %1263 = vst.msk [vmem:[#allocation2 + $0xe0] sm:$0xff] %vm312_vm2, %v1198_v20  ;;  %1295 = vst.msk [vmem:[#allocation2 + $0x1e0] sm:$0xff] %vm312_vm2, %v1230_v21 }
 0x168   : > { %v1565_v29 = vmax.f32 %v1501_v19, 0.0  ;;  %v1431_v31 = vmul.f32 %v2689_v13, %v1360_v24  ;;  %v996_v32 = vpop.f32.mrf.mxu0  ;;  %v1156_v33 = vpop.f32.mrf.mxu1 }
 0x169   : > { %1597 = vst.msk [vmem:[%s2444_s19 + $0xc8] sm:$0xff] %vm312_vm2, %v1533_v28  ;;  %v1470_v34 = vadd.f32 %v2702_v17, %v1399_v30  ;;  %v1199_v36 = vadd.f32 %v996_v32, %v406_v22  ;;  %v1231_v37 = vadd.f32 %v1156_v33, %v438_v27 }
 0x16a   : > { %1629 = vst.msk [vmem:[%s2444_s19 + $0x1c8] sm:$0xff] %vm312_vm2, %v1565_v29  ;;  %v1502_v35 = vadd.f32 %v2702_v17, %v1431_v31  ;;  %v1329_v40 = vld [vmem:[#allocation2 + $0xd8] sm:$0xff]  ;;  %v998_v43 = vpop.f32.mrf.mxu0  ;;  %v1158_v44 = vpop.f32.mrf.mxu1 }
 0x16b   : > { %v1361_v42 = vld [vmem:[#allocation2 + $0x1d8] sm:$0xff]  ;;  %v1534_v46 = vmax.f32 %v1470_v34, 0.0  ;;  %v1400_v48 = vmul.f32 %v2689_v13, %v1329_v40  ;;  %1264 = vst.msk [vmem:[#allocation2 + $0xe8] sm:$0xff] %vm312_vm2, %v1199_v36  ;;  %1296 = vst.msk [vmem:[#allocation2 + $0x1e8] sm:$0xff] %vm312_vm2, %v1231_v37 }
 0x16c   : > { %v1566_v47 = vmax.f32 %v1502_v35, 0.0  ;;  %v1432_v49 = vmul.f32 %v2689_v13, %v1361_v42  ;;  %v1001_v50 = vpop.f32.mrf.mxu0  ;;  %v1161_v51 = vpop.f32.mrf.mxu1 }
 0x16d   : > { %1598 = vst.msk [vmem:[%s2444_s19 + $0xd0] sm:$0xff] %vm312_vm2, %v1534_v46  ;;  %v1471_v52 = vadd.f32 %v2702_v17, %v1400_v48  ;;  %v1200_v54 = vadd.f32 %v1001_v50, %v407_v39  ;;  %v1232_v55 = vadd.f32 %v1161_v51, %v439_v45 }
 0x16e   : > { %1630 = vst.msk [vmem:[%s2444_s19 + $0x1d0] sm:$0xff] %vm312_vm2, %v1566_v47  ;;  %v1503_v53 = vadd.f32 %v2702_v17, %v1432_v49  ;;  %v1330_v57 = vld [vmem:[#allocation2 + $0xe0] sm:$0xff]  ;;  %v1003_v59 = vpop.f32.mrf.mxu0  ;;  %v1163_v60 = vpop.f32.mrf.mxu1 }
 0x16f   : > { %v1362_v58 = vld [vmem:[#allocation2 + $0x1e0] sm:$0xff]  ;;  %v1535_v62 = vmax.f32 %v1471_v52, 0.0  ;;  %v1401_v0 = vmul.f32 %v2689_v13, %v1330_v57  ;;  %1265 = vst.msk [vmem:[#allocation2 + $0xf0] sm:$0xff] %vm312_vm2, %v1200_v54  ;;  %1297 = vst.msk [vmem:[#allocation2 + $0x1f0] sm:$0xff] %vm312_vm2, %v1232_v55 }
 0x170   : > { %v1567_v63 = vmax.f32 %v1503_v53, 0.0  ;;  %v1433_v1 = vmul.f32 %v2689_v13, %v1362_v58  ;;  %v1006_v2 = vpop.f32.mrf.mxu0  ;;  %v1166_v3 = vpop.f32.mrf.mxu1 }
 0x171   : > { %1599 = vst.msk [vmem:[%s2444_s19 + $0xd8] sm:$0xff] %vm312_vm2, %v1535_v62  ;;  %v1472_v4 = vadd.f32 %v2702_v17, %v1401_v0  ;;  %v1201_v6 = vadd.f32 %v1006_v2, %v408_v56  ;;  %v1233_v38 = vadd.f32 %v1166_v3, %v440_v61 }
 0x172   : > { %1631 = vst.msk [vmem:[%s2444_s19 + $0x1d8] sm:$0xff] %vm312_vm2, %v1567_v63  ;;  %v1504_v5 = vadd.f32 %v2702_v17, %v1433_v1  ;;  %v1331_v7 = vld [vmem:[#allocation2 + $0xe8] sm:$0xff]  ;;  %v1008_v9 = vpop.f32.mrf.mxu0  ;;  %v1168_v10 = vpop.f32.mrf.mxu1 }
 0x173   : > { %v1363_v8 = vld [vmem:[#allocation2 + $0x1e8] sm:$0xff]  ;;  %v1536_v11 = vmax.f32 %v1472_v4, 0.0  ;;  %v1402_v14 = vmul.f32 %v2689_v13, %v1331_v7  ;;  %1266 = vst.msk [vmem:[#allocation2 + $0xf8] sm:$0xff] %vm312_vm2, %v1201_v6  ;;  %1298 = vst.msk [vmem:[#allocation2 + $0x1f8] sm:$0xff] %vm312_vm2, %v1233_v38 }
 0x174   : > { %v1568_v12 = vmax.f32 %v1504_v5, 0.0  ;;  %v1434_v41 = vmul.f32 %v2689_v13, %v1363_v8 }
 0x175   : > { %1600 = vst.msk [vmem:[%s2444_s19 + $0xe0] sm:$0xff] %vm312_vm2, %v1536_v11  ;;  %v1473_v15 = vadd.f32 %v2702_v17, %v1402_v14 }
 0x176   : > { %1632 = vst.msk [vmem:[%s2444_s19 + $0x1e0] sm:$0xff] %vm312_vm2, %v1568_v12  ;;  %v1505_v16 = vadd.f32 %v2702_v17, %v1434_v41  ;;  %v1332_v18 = vld [vmem:[#allocation2 + $0xf0] sm:$0xff] }
 0x177   : > { %v1364_v19 = vld [vmem:[#allocation2 + $0x1f0] sm:$0xff]  ;;  %v1537_v20 = vmax.f32 %v1473_v15, 0.0  ;;  %v1403_v22 = vmul.f32 %v2689_v13, %v1332_v18 }
 0x178   : > { %v1569_v21 = vmax.f32 %v1505_v16, 0.0  ;;  %v1435_v23 = vmul.f32 %v2689_v13, %v1364_v19 }
 0x179   : > { %1601 = vst.msk [vmem:[%s2444_s19 + $0xe8] sm:$0xff] %vm312_vm2, %v1537_v20  ;;  %v1474_v24 = vadd.f32 %v2702_v17, %v1403_v22 }
 0x17a   : > { %1633 = vst.msk [vmem:[%s2444_s19 + $0x1e8] sm:$0xff] %vm312_vm2, %v1569_v21  ;;  %v1506_v25 = vadd.f32 %v2702_v17, %v1435_v23  ;;  %v1333_v26 = vld [vmem:[#allocation2 + $0xf8] sm:$0xff] }
 0x17b   : > { %v1365_v27 = vld [vmem:[#allocation2 + $0x1f8] sm:$0xff]  ;;  %v1538_v28 = vmax.f32 %v1474_v24, 0.0  ;;  %v1404_v30 = vmul.f32 %v2689_v13, %v1333_v26 }
 0x17c   : > { %v1570_v29 = vmax.f32 %v1506_v25, 0.0  ;;  %v1436_v31 = vmul.f32 %v2689_v13, %v1365_v27 }
 0x17d   : > { %1602 = vst.msk [vmem:[%s2444_s19 + $0xf0] sm:$0xff] %vm312_vm2, %v1538_v28  ;;  %v1475_v32 = vadd.f32 %v2702_v17, %v1404_v30 }
 0x17e   : > { %1634 = vst.msk [vmem:[%s2444_s19 + $0x1f0] sm:$0xff] %vm312_vm2, %v1570_v29  ;;  %v1507_v33 = vadd.f32 %v2702_v17, %v1436_v31 }
 0x17f   : > { %v1539_v34 = vmax.f32 %v1475_v32, 0.0 }
 0x180   : > { %v1571_v35 = vmax.f32 %v1507_v33, 0.0 }
 0x181   : > { %1603 = vst.msk [vmem:[%s2444_s19 + $0xf8] sm:$0xff] %vm312_vm2, %v1539_v34 }
 0x182   : > { %1635 = vst.msk [vmem:[%s2444_s19 + $0x1f8] sm:$0xff] %vm312_vm2, %v1571_v35 }
 0x183 PF: > { %s14_s17 = sadd.s32 1, %s1932_s17   ;;  %s2780_s15 = smov %s1928_s16 }
 0x184   : > { %p11_p5 = scmp.ge.s32.totalorder %s14_s17, 6   ;;  %s2781_s16 = smov %s2783_s18 }
 0x186   :  { %13 = sbr.rel (!%p11_p5) target bundleno = 2 (0x2), region = 83 }

</bundles_post_ra>
